<compile_context>
chip_gen: v7x
topology: tpu7x:2x2x1
jax: 0.10.0
libtpu: 0.0.40
codegen_flags: <defaults>
</compile_context>

<pallas_src>
import jax
import jax.numpy as jnp
from jax.experimental import pallas as pl
from jax.experimental.pallas import tpu as pltpu


_STREAM_TILE_BUDGET_BYTES = 8 << 20   # budget for the double-buffered streamed input
_SMALL_PARAM_ELEMS = 16 * 1024        # below this, use plain jnp (launch overhead gate)


def _round_up(x: int, m: int) -> int:
    return ((x + m - 1) // m) * m


def _make_gram_kernel(contract_rows: bool, valid: int, tile: int, ragged: bool):
    """Build a kernel accumulating G (r, r) over streamed tiles of A.

    contract_rows=True : A is (m, r), streamed over rows,    G = A^T A
    contract_rows=False: A is (r, n), streamed over columns, G = A A^T
    Emits ||G - I_r||_F^2 into out_ref[0, 0] on the last grid step.
    """
    stream_axis = 0 if contract_rows else 1
    dims = (((0,), (0,)), ((), ())) if contract_rows else (((1,), (1,)), ((), ()))

    def kernel(a_ref, out_ref, g_acc):
        k = pl.program_id(0)

        @pl.when(k == 0)
        def _():
            g_acc[...] = jnp.zeros_like(g_acc)

        a = a_ref[...]
        if ragged:
            # Boundary-block contents beyond `valid` are unspecified -> zero-mask.
            idx = jax.lax.broadcasted_iota(jnp.int32, a.shape, stream_axis) + k * tile
            a = jnp.where(idx < valid, a, jnp.zeros((), a.dtype))

        # Native-dtype MXU matmul, f32 accumulation; contraction expressed via
        # dot_general so no transposed copy of the tile is materialized.
        g_acc[...] += jax.lax.dot_general(
            a, a, dimension_numbers=dims, preferred_element_type=jnp.float32)

        @pl.when(k == pl.num_programs(0) - 1)
        def _():
            g = g_acc[...]
            r = g.shape[0]
            row = jax.lax.broadcasted_iota(jnp.int32, (r, r), 0)
            col = jax.lax.broadcasted_iota(jnp.int32, (r, r), 1)
            trace = jnp.sum(jnp.where(row == col, g, 0.0))
            # ||G - I||_F^2 = sum(G^2) - 2 tr(G) + r
            out_ref[0, 0] = jnp.sum(g * g) - 2.0 * trace + float(r)

    return kernel


def _gram_ortho_sq_pallas(a: jax.Array, contract_rows: bool) -> jax.Array:
    """||A^T A - I||_F^2 (contract_rows) or ||A A^T - I||_F^2 (else), via Pallas."""
    if a.dtype not in (jnp.bfloat16, jnp.float32):
        a = a.astype(jnp.float32)
    itemsize = a.dtype.itemsize

    if contract_rows:
        stream, r = a.shape
        align = 8            # streamed axis is the sublane (second-to-last) dim
    else:
        r, stream = a.shape
        align = 128          # streamed axis is the lane (last) dim

    # Big streamed tiles: keep 2 x (tile x r) buffers under the VMEM budget.
    tile = _STREAM_TILE_BUDGET_BYTES // (2 * max(1, r) * itemsize)
    tile = max(align, (tile // align) * align)
    tile = min(tile, _round_up(stream, align))
    grid = (pl.cdiv(stream, tile),)
    ragged = (stream % tile) != 0

    if contract_rows:
        block_shape = (tile, r)
        index_map = lambda k: (k, 0)
    else:
        block_shape = (r, tile)
        index_map = lambda k: (0, k)

    kernel = _make_gram_kernel(contract_rows, stream, tile, ragged)

    vmem_need = 2 * tile * r * itemsize + 2 * r * r * 4 + (2 << 20)
    vmem_limit = int(min(max(vmem_need, 32 << 20), 64 << 20))

    out = pl.pallas_call(
        kernel,
        out_shape=jax.ShapeDtypeStruct((1, 1), jnp.float32),
        grid_spec=pltpu.PrefetchScalarGridSpec(
            num_scalar_prefetch=0,
            grid=grid,
            in_specs=[pl.BlockSpec(block_shape, index_map)],
            out_specs=pl.BlockSpec(memory_space=pltpu.MemorySpace.SMEM),
            scratch_shapes=[pltpu.VMEM((r, r), jnp.float32)],
        ),
        compiler_params=pltpu.CompilerParams(
            dimension_semantics=("arbitrary",),
            vmem_limit_bytes=vmem_limit,
        ),
    )(a)
    return out[0, 0]


def _gram_ortho_sq_jnp(a: jax.Array, contract_rows: bool) -> jax.Array:
    """Plain-jnp fallback for tiny parameters (pallas launch overhead gate)."""
    a32 = a.astype(jnp.float32)
    g = a32.T @ a32 if contract_rows else a32 @ a32.T
    r = g.shape[0]
    d = g - jnp.eye(r, dtype=jnp.float32)
    return jnp.sum(d * d)


def gram_orthogonality_sq(a: jax.Array, contract_rows: bool = True) -> jax.Array:
    a = jnp.asarray(a)
    if a.size < _SMALL_PARAM_ELEMS:
        return _gram_ortho_sq_jnp(a, contract_rows)
    return _gram_ortho_sq_pallas(a, contract_rows)


def orthogonal_loss(named_parameters, factor: float = 1.0):
    """Pallas-backed equivalent of OrthogonalLoss.forward(model).

    `named_parameters` is an iterable of (name, array) pairs mimicking
    torch.nn.Module.named_parameters(). Control flow (including the counter
    overwrite by the 4-D reshape branches) mirrors the PyTorch reference.
    """
    loss = 0.0
    n = 0
    for name, parameter in named_parameters:
        tail = name.split('.')[-1]
        if tail == 'U':
            if parameter.ndim < 3:
                U = parameter
            else:
                # NOTE: the reference overwrites the counter `n` here; replicated.
                n, c, w, h = parameter.shape
                U = parameter.reshape(n, c * w * h)
            n += 1
            r = U.shape[1]
            loss = loss + gram_orthogonality_sq(U, contract_rows=True) / r
        elif tail == 'Vh':
            if parameter.ndim < 3:
                Vh = parameter
            else:
                # NOTE: counter overwrite replicated from the reference.
                n, c, w, h = parameter.shape
                Vh = parameter.reshape(n, c * w * h)
            r = Vh.shape[0]
            # Vh mode: G = Vh @ Vh^T computed directly, no host-side Vh.T copy.
            loss = loss + gram_orthogonality_sq(Vh, contract_rows=False) / r
    if not n:
        return jnp.float32(0.0)
    return factor * loss / n


def orthogonal_loss_ref(named_parameters, factor: float = 1.0):
    """Pure-jnp reference replicating the PyTorch forward for verification."""
    loss = 0.0
    n = 0
    for name, parameter in named_parameters:
        tail = name.split('.')[-1]
        if tail == 'U':
            if parameter.ndim < 3:
                U = parameter
            else:
                n, c, w, h = parameter.shape
                U = parameter.reshape(n, c * w * h)
            n += 1
            U = U.astype(jnp.float32)
            r = U.shape[1]
            d = U.T @ U - jnp.eye(r, dtype=jnp.float32)
            loss = loss + jnp.sum(d * d) / r
        elif tail == 'Vh':
            if parameter.ndim < 3:
                Vh = parameter
            else:
                n, c, w, h = parameter.shape
                Vh = parameter.reshape(n, c * w * h)
            Vh = Vh.astype(jnp.float32)
            r = Vh.shape[0]
            d = Vh @ Vh.T - jnp.eye(r, dtype=jnp.float32)
            loss = loss + jnp.sum(d * d) / r
    if not n:
        return jnp.float32(0.0)
    return factor * loss / n


if __name__ == "__main__":
    key = jax.random.PRNGKey(0)
    keys = jax.random.split(key, 10)

    # Synthetic "SVD-decomposed model" parameters (deterministic init).
    named_params = [
        # tiny params -> plain-jnp fast path (pallas launch-overhead gate)
        ("fc1.U",    jax.random.normal(keys[0], (32, 8),      jnp.float32) * 0.2),
        ("fc1.Vh",   jax.random.normal(keys[1], (8, 16),      jnp.float32) * 0.2),
        ("fc2.bias", jax.random.normal(keys[2], (16,),        jnp.float32)),        # ignored
        ("conv1.U",  jax.random.normal(keys[3], (4, 2, 3, 3), jnp.float32) * 0.2),  # NCHW-style
        ("conv1.Vh", jax.random.normal(keys[4], (6, 2, 2, 2), jnp.float32) * 0.2),
        # larger params -> Pallas Gram kernel (single-tile)
        ("fc3.U",    jax.random.normal(keys[5], (2048, 64),   jnp.float32) * 0.02),
        ("fc3.Vh",   jax.random.normal(keys[6], (48, 1536),   jnp.float32) * 0.02),
        # ragged tiles -> exercise in-kernel masking (no host jnp.pad)
        ("fc4.U",    jax.random.normal(keys[7], (1003, 128),  jnp.float32) * 0.03),
        ("fc4.Vh",   jax.random.normal(keys[8], (32, 700),    jnp.float32) * 0.04),
        # multi-step f32 accumulation (grid > 1, ragged last tile)
        ("fc5.U",    jax.random.normal(keys[9], (4160, 256),  jnp.float32) * 0.015),
        # bf16 ingestion, f32 accumulation in the kernel
        ("fc6.U",    (jax.random.normal(keys[5], (2048, 128), jnp.float32) * 0.02
                      ).astype(jnp.bfloat16)),
    ]

    factor = 1.5
    out = jax.block_until_ready(orthogonal_loss(named_params, factor=factor))
    ref = jax.block_until_ready(orthogonal_loss_ref(named_params, factor=factor))

    assert jnp.allclose(out, ref, rtol=2e-3, atol=2e-3), (out, ref)
    print("KERNEL_OK")
</pallas_src>

<mosaic_0001>
module attributes {stable_mosaic.version = 11 : i64} {
  func.func @kernel(%arg0: i32, %arg1: memref<2048x64xf32, #tpu.memory_space<vmem>>, %arg2: memref<1x1xf32, #tpu.memory_space<smem>>, %arg3: memref<64x64xf32, #tpu.memory_space<vmem>>) attributes {dimension_semantics = [#tpu.dimension_semantics<arbitrary>], iteration_bounds = array<i64: 1>, scalar_prefetch = 0 : i64, scratch_operands = 1 : i64, tpu.core_type = #tpu.core_type<tc>, window_params = [{transform_indices = @transform_0, window_bounds = array<i64: 2048, 64>}, {transform_indices = @transform_1, window_bounds = array<i64: 1, 1>}]} {
    %c0_i32 = arith.constant 0 : i32
    %0 = arith.cmpi eq, %arg0, %c0_i32 : i32
    %1 = arith.extui %0 : i1 to i32
    %c0_i32_0 = arith.constant 0 : i32
    %2 = arith.cmpi ne, %1, %c0_i32_0 : i32
    scf.if %2 {
      %cst_8 = arith.constant 0.000000e+00 : f32
      %11 = vector.broadcast %cst_8 : f32 to vector<64x64xf32>
      %c0_9 = arith.constant 0 : index
      %c0_10 = arith.constant 0 : index
      %12 = vector.load %arg3[%c0_9, %c0_10] : memref<64x64xf32, #tpu.memory_space<vmem>>, vector<64x64xf32>
      tpu.vector_store %arg3[%c0_9, %c0_10], %11 {strides = array<i32>} : memref<64x64xf32, #tpu.memory_space<vmem>>, vector<64x64xf32>,
    } else {
    }
    %c0 = arith.constant 0 : index
    %c0_1 = arith.constant 0 : index
    %3 = vector.load %arg1[%c0, %c0_1] : memref<2048x64xf32, #tpu.memory_space<vmem>>, vector<2048x64xf32>
    %c0_2 = arith.constant 0 : index
    %c0_3 = arith.constant 0 : index
    %4 = vector.load %arg3[%c0_2, %c0_3] : memref<64x64xf32, #tpu.memory_space<vmem>>, vector<64x64xf32>
    %cst = arith.constant dense<0.000000e+00> : vector<64x64xf32>
    %5 = tpu.matmul %3, %3, %cst {dimension_numbers = #tpu.dot_dimension_numbers<[0], [0], [1], [1], [0, 1, 1, 1], [], []>} : vector<2048x64xf32>, vector<2048x64xf32>, vector<64x64xf32> -> vector<64x64xf32>
    %6 = arith.addf %4, %5 : vector<64x64xf32>
    %c0_4 = arith.constant 0 : index
    %c0_5 = arith.constant 0 : index
    %7 = vector.load %arg3[%c0_4, %c0_5] : memref<64x64xf32, #tpu.memory_space<vmem>>, vector<64x64xf32>
    tpu.vector_store %arg3[%c0_4, %c0_5], %6 {strides = array<i32>} : memref<64x64xf32, #tpu.memory_space<vmem>>, vector<64x64xf32>,
    %c0_i32_6 = arith.constant 0 : i32
    %8 = arith.cmpi eq, %arg0, %c0_i32_6 : i32
    %9 = arith.extui %8 : i1 to i32
    %c0_i32_7 = arith.constant 0 : i32
    %10 = arith.cmpi ne, %9, %c0_i32_7 : i32
    scf.if %10 {
      %c0_8 = arith.constant 0 : index
      %c0_9 = arith.constant 0 : index
      %11 = vector.load %arg3[%c0_8, %c0_9] : memref<64x64xf32, #tpu.memory_space<vmem>>, vector<64x64xf32>
      %12 = tpu.iota {dimensions = array<i32: 0>} : vector<64x64xi32>
      %13 = tpu.iota {dimensions = array<i32: 1>} : vector<64x64xi32>
      %14 = arith.cmpi eq, %12, %13 : vector<64x64xi32>
      %cst_10 = arith.constant 0.000000e+00 : f32
      %15 = vector.broadcast %cst_10 : f32 to vector<64x64xf32>
      %16 = arith.select %14, %11, %15 : vector<64x64xi1>, vector<64x64xf32>
      %17 = vector.shape_cast %16 : vector<64x64xf32> to vector<1x64x64xf32>
      %cst_11 = arith.constant dense<0.000000e+00> : vector<1xf32>
      %18 = vector.multi_reduction <add>, %17, %cst_11 [1, 2] : vector<1x64x64xf32> to vector<1xf32>
      %19 = vector.shape_cast %18 : vector<1xf32> to vector<1x1x1xf32>
      %20 = vector.extract %19[0, 0, 0] : f32 from vector<1x1x1xf32>
      %21 = arith.mulf %11, %11 : vector<64x64xf32>
      %22 = vector.shape_cast %21 : vector<64x64xf32> to vector<1x64x64xf32>
      %cst_12 = arith.constant dense<0.000000e+00> : vector<1xf32>
      %23 = vector.multi_reduction <add>, %22, %cst_12 [1, 2] : vector<1x64x64xf32> to vector<1xf32>
      %24 = vector.shape_cast %23 : vector<1xf32> to vector<1x1x1xf32>
      %25 = vector.extract %24[0, 0, 0] : f32 from vector<1x1x1xf32>
      %cst_13 = arith.constant 2.000000e+00 : f32
      %26 = arith.mulf %cst_13, %20 : f32
      %27 = arith.subf %25, %26 : f32
      %cst_14 = arith.constant 6.400000e+01 : f32
      %28 = arith.addf %27, %cst_14 : f32
      %c0_15 = arith.constant 0 : index
      %c0_16 = arith.constant 0 : index
      %29 = memref.load %arg2[%c0_15, %c0_16] : memref<1x1xf32, #tpu.memory_space<smem>>
      memref.store %28, %arg2[%c0_15, %c0_16] : memref<1x1xf32, #tpu.memory_space<smem>>
    } else {
    }
    return
  }
  func.func @transform_0(%arg0: i32) -> (i32, i32) {
    %c0_i32 = arith.constant 0 : i32
    %c0_i32_0 = arith.constant 0 : i32
    return %arg0, %c0_i32 : i32, i32
  }
  func.func @transform_1(%arg0: i32) -> (i32, i32) {
    %c0_i32 = arith.constant 0 : i32
    %c0_i32_0 = arith.constant 0 : i32
    %c0_i32_1 = arith.constant 0 : i32
    return %c0_i32, %c0_i32_0 : i32, i32
  }
}

</mosaic_0001>

<bundles_post_ra>
// kernel: tpu_custom_call.1
= control target key start
LH: loop header
LB: loop body
LE: loop exit
PB: predicated region body
PF: predicated region fallthrough
CT: control target
= control target key end

     0   :  { %s5007_s0 = inlined_call_operand.vmem [shape: f32[2048,64], index: 0, kind: input, shape index: {}]   ;;  %s5008_s1 = inlined_call_operand.hbm [shape: f32[1,1], index: 1, kind: output, shape index: {}]  }
   0x1   :  { %v3080_v0 = vld [vmem:[%s5007_s0 + $0x100] sm:$0xff]  ;;  %v3102_v5 = vld [vmem:[%s5007_s0 + $0x108] sm:$0xff]  ;;  %v3128_v12 = vld [vmem:[%s5007_s0 + $0x110] sm:$0xff] }
   0x2   :  { %v3085_v1 = vld [vmem:[%s5007_s0 + $0x180] sm:$0xff]  ;;  %v3107_v6 = vld [vmem:[%s5007_s0 + $0x188] sm:$0xff]  ;;  %v3133_v13 = vld [vmem:[%s5007_s0 + $0x190] sm:$0xff] }
   0x3   :  { %v3090_v2 = vld [vmem:[%s5007_s0] sm:$0xff]  ;;  %v2549_v3 = vpack.i.bf16 %v3080_v0, %v3085_v1  ;;  %v3114_v8 = vld [vmem:[%s5007_s0 + $0x8] sm:$0xff]  ;;  %v2551_v10 = vpack.i.bf16 %v3102_v5, %v3107_v6  ;;  %v3138_v14 = vld [vmem:[%s5007_s0 + $0x10] sm:$0xff]  ;;  %v2553_v16 = vpack.i.bf16 %v3128_v12, %v3133_v13 }
   0x4   :  { %v3097_v4 = vld [vmem:[%s5007_s0 + $0x80] sm:$0xff]  ;;  %v3119_v9 = vld [vmem:[%s5007_s0 + $0x88] sm:$0xff]  ;;  %v3143_v15 = vld [vmem:[%s5007_s0 + $0x90] sm:$0xff] }
   0x5   :  { %v2477_v7 = vpack.i.bf16 %v3097_v4, %v3090_v2  ;;  %2550 = vxpose.xlu1.b32.start [1/16] (narrow) %v2549_v3, 64  ;;  %v2479_v11 = vpack.i.bf16 %v3119_v9, %v3114_v8  ;;  %v2481_v17 = vpack.i.bf16 %v3143_v15, %v3138_v14  ;;  %v3152_v18 = vld [vmem:[%s5007_s0 + $0x118] sm:$0xff]  ;;  %v3176_v24 = vld [vmem:[%s5007_s0 + $0x120] sm:$0xff]  ;;  %v3200_v30 = vld [vmem:[%s5007_s0 + $0x128] sm:$0xff] }
   0x6   :  { %v3157_v19 = vld [vmem:[%s5007_s0 + $0x198] sm:$0xff]  ;;  %v3181_v25 = vld [vmem:[%s5007_s0 + $0x1a0] sm:$0xff]  ;;  %v3205_v31 = vld [vmem:[%s5007_s0 + $0x1a8] sm:$0xff] }
   0x7   :  { %2478 = vxpose.xlu0.b32.start [1/16] (narrow) %v2477_v7, 64  ;;  %v3162_v20 = vld [vmem:[%s5007_s0 + $0x18] sm:$0xff]  ;;  %v2555_v22 = vpack.i.bf16 %v3152_v18, %v3157_v19  ;;  %v3186_v26 = vld [vmem:[%s5007_s0 + $0x20] sm:$0xff]  ;;  %v2557_v28 = vpack.i.bf16 %v3176_v24, %v3181_v25  ;;  %v3210_v32 = vld [vmem:[%s5007_s0 + $0x28] sm:$0xff]  ;;  %v2559_v34 = vpack.i.bf16 %v3200_v30, %v3205_v31 }
   0x8   :  { %v3167_v21 = vld [vmem:[%s5007_s0 + $0x98] sm:$0xff]  ;;  %v3191_v27 = vld [vmem:[%s5007_s0 + $0xa0] sm:$0xff]  ;;  %v3215_v33 = vld [vmem:[%s5007_s0 + $0xa8] sm:$0xff] }
   0x9   :  { %2552 = vxpose.xlu1.b32.cont [2/16] (narrow) %v2551_v10, 64  ;;  %v2483_v23 = vpack.i.bf16 %v3167_v21, %v3162_v20  ;;  %v2485_v29 = vpack.i.bf16 %v3191_v27, %v3186_v26  ;;  %v2487_v35 = vpack.i.bf16 %v3215_v33, %v3210_v32  ;;  %v3224_v36 = vld [vmem:[%s5007_s0 + $0x130] sm:$0xff]  ;;  %v3244_v40 = vld [vmem:[%s5007_s0 + $0x300] sm:$0xff]  ;;  %v3249_v41 = vld [vmem:[%s5007_s0 + $0x308] sm:$0xff] }
   0xa   :  { %v3229_v37 = vld [vmem:[%s5007_s0 + $0x1b0] sm:$0xff]  ;;  %v3258_v44 = vld [vmem:[%s5007_s0 + $0x200] sm:$0xff]  ;;  %v3263_v45 = vld [vmem:[%s5007_s0 + $0x208] sm:$0xff] }
   0xb   :  { %2480 = vxpose.xlu0.b32.cont [2/16] (narrow) %v2479_v11, 64  ;;  %v3234_v38 = vld [vmem:[%s5007_s0 + $0x30] sm:$0xff]  ;;  %v2561_v43 = vpack.i.bf16 %v3224_v36, %v3229_v37  ;;  %v3270_v47 = vld [vmem:[%s5007_s0 + $0x138] sm:$0xff]  ;;  %v3308_v57 = vld [vmem:[%s5007_s0 + $0x140] sm:$0xff] }
   0xc   :  { %v3239_v39 = vld [vmem:[%s5007_s0 + $0xb0] sm:$0xff]  ;;  %v3275_v48 = vld [vmem:[%s5007_s0 + $0x1b8] sm:$0xff]  ;;  %v3313_v58 = vld [vmem:[%s5007_s0 + $0x1c0] sm:$0xff] }
   0xd   :  { %2554 = vxpose.xlu1.b32.cont [3/16] (narrow) %v2553_v16, 64  ;;  %v2489_v46 = vpack.i.bf16 %v3239_v39, %v3234_v38  ;;  %v3280_v49 = vld [vmem:[%s5007_s0 + $0x38] sm:$0xff]  ;;  %v3292_v52 = vld [vmem:[%s5007_s0 + $0x310] sm:$0xff]  ;;  %v2563_v55 = vpack.i.bf16 %v3270_v47, %v3275_v48  ;;  %v3318_v59 = vld [vmem:[%s5007_s0 + $0x40] sm:$0xff]  ;;  %v2565_v61 = vpack.i.bf16 %v3308_v57, %v3313_v58 }
   0xe   :  { %v3287_v51 = vld [vmem:[%s5007_s0 + $0xb8] sm:$0xff]  ;;  %v3323_v60 = vld [vmem:[%s5007_s0 + $0xc0] sm:$0xff]  ;;  %v3332_v63 = vld [vmem:[%s5007_s0 + $0x148] sm:$0xff] }
   0xf   :  { %2482 = vxpose.xlu0.b32.cont [3/16] (narrow) %v2481_v17, 64  ;;  %v3297_v53 = vld [vmem:[%s5007_s0 + $0x318] sm:$0xff]  ;;  %v2491_v56 = vpack.i.bf16 %v3287_v51, %v3280_v49  ;;  %v2493_v62 = vpack.i.bf16 %v3323_v60, %v3318_v59  ;;  %v3337_v3 = vld [vmem:[%s5007_s0 + $0x1c8] sm:$0xff]  ;;  %v3356_v17 = vld [vmem:[%s5007_s0 + $0x150] sm:$0xff] }
  0x10   :  { %v3342_v7 = vld [vmem:[%s5007_s0 + $0x48] sm:$0xff]  ;;  %v2567_v11 = vpack.i.bf16 %v3332_v63, %v3337_v3 }
  0x11   :  { %2556 = vxpose.xlu1.b32.cont [4/16] (narrow) %v2555_v22, 64  ;;  %v3347_v10 = vld [vmem:[%s5007_s0 + $0xc8] sm:$0xff]  ;;  %v3361_v22 = vld [vmem:[%s5007_s0 + $0x1d0] sm:$0xff] }
  0x12   :  { %v2495_v16 = vpack.i.bf16 %v3347_v10, %v3342_v7 }
  0x13   :  { %2484 = vxpose.xlu0.b32.cont [4/16] (narrow) %v2483_v23, 64  ;;  %v3366_v23 = vld [vmem:[%s5007_s0 + $0x50] sm:$0xff] }
  0x15   :  { %2558 = vxpose.xlu1.b32.cont [5/16] (narrow) %v2557_v28, 64  ;;  %v3371_v28 = vld [vmem:[%s5007_s0 + $0xd0] sm:$0xff] }
  0x17   :  { %2486 = vxpose.xlu0.b32.cont [5/16] (narrow) %v2485_v29, 64  ;;  %v2219_v29 = vpack.c.bf16 %v3167_v21, %v3143_v15  ;;  %v2247_v15 = vpack.c.bf16 %v3107_v6, %v3085_v1  ;;  %v2249_v21 = vpack.c.bf16 %v3102_v5, %v3080_v0  ;;  %v3423_v0 = vld [vmem:[%s5007_s0 + $0x500] sm:$0xff]  ;;  %v3428_v1 = vld [vmem:[%s5007_s0 + $0x508] sm:$0xff] }
  0x18   :  { %5066 = vst [vmem:[#allocation6_spill] sm:$0xff] %v3423_v0  ;;  %5067 = vst [vmem:[#allocation7_spill] sm:$0xff] %v3428_v1  ;;  %v3435_v6 = vld [vmem:[%s5007_s0 + $0x1e0] sm:$0xff] }
  0x19   :  { %2560 = vxpose.xlu1.b32.cont [6/16] (narrow) %v2559_v34, 64  ;;  %v2215_v34 = vpack.c.bf16 %v3119_v9, %v3097_v4  ;;  %v3391_v4 = vld [vmem:[%s5007_s0 + $0x1d8] sm:$0xff]  ;;  %v2221_v9 = vpack.c.bf16 %v3162_v20, %v3138_v14  ;;  %v2251_v14 = vpack.c.bf16 %v3157_v19, %v3133_v13  ;;  %v2223_v20 = vpack.c.bf16 %v3215_v33, %v3191_v27  ;;  %v3442_v19 = vld [vmem:[%s5007_s0 + $0x400] sm:$0xff]  ;;  %v3447_v27 = vld [vmem:[%s5007_s0 + $0x408] sm:$0xff] }
  0x1a   :  { %2248 = vmatprep.subr.bf16.mxu1 %v2247_v15  ;;  %5068 = vst [vmem:[#allocation8_spill] sm:$0xff] %v3442_v19  ;;  %5069 = vst [vmem:[#allocation9_spill] sm:$0xff] %v3447_v27  ;;  %v2253_v33 = vpack.c.bf16 %v3152_v18, %v3128_v12  ;;  %v2255_v12 = vpack.c.bf16 %v3205_v31, %v3181_v25  ;;  %v2227_v18 = vpack.c.bf16 %v3287_v51, %v3239_v39  ;;  %v3488_v39 = vld [vmem:[%s5007_s0 + $0x168] sm:$0xff] }
  0x1b   :  { %2488 = vxpose.xlu0.b32.cont [6/16] (narrow) %v2487_v35, 64  ;;  %v2569_v35 = vpack.i.bf16 %v3356_v17, %v3361_v22  ;;  %2216 = vmatprep.subr.bf16.mxu0 %v2215_v34  ;;  %v3493_v51 = vld [vmem:[%s5007_s0 + $0x1e8] sm:$0xff]  ;;  %v2259_v15 = vpack.c.bf16 %v3275_v48, %v3229_v37  ;;  %v3522_v37 = vld [vmem:[%s5007_s0 + $0x1f0] sm:$0xff]  ;;  %v2261_v48 = vpack.c.bf16 %v3270_v47, %v3224_v36 }
  0x1c   :  { %2250 = vmatpush3.bf16.msra.mxu1 %v2249_v21  ;;  %v52_v21 = vld [vmem:[%s5007_s0 + $0xf0] sm:$0xff] }
  0x1d   :  { %2562 = vxpose.xlu1.b32.cont [7/16] (narrow) %v2561_v43, 64  ;;  %v2217_v43 = vpack.c.bf16 %v3114_v8, %v3090_v2  ;;  %v3398_v2 = vld [vmem:[%s5007_s0 + $0x58] sm:$0xff]  ;;  %2252 = vmatprep.subr.bf16.mxu1 %v2251_v14  ;;  %v2263_v14 = vpack.c.bf16 %v3337_v3, %v3313_v58  ;;  %v2265_v3 = vpack.c.bf16 %v3332_v63, %v3308_v57 }
  0x1e   :  { %v3403_v8 = vld [vmem:[%s5007_s0 + $0xd8] sm:$0xff] }
  0x1f   :  { %2490 = vxpose.xlu0.b32.cont [7/16] (narrow) %v2489_v46, 64  ;;  %v2497_v46 = vpack.i.bf16 %v3371_v28, %v3366_v23  ;;  %2218 = vmatpush3.bf16.msra.mxu0 %v2217_v43  ;;  %v2499_v5 = vpack.i.bf16 %v3403_v8, %v3398_v2  ;;  %v2229_v43 = vpack.c.bf16 %v3280_v49, %v3234_v38  ;;  %v3517_v49 = vld [vmem:[%s5007_s0 + $0x170] sm:$0xff]  ;;  %v85_v58 = vld [vmem:[%s5007_s0 + $0x1f8] sm:$0xff] }
  0x20   :  { %2220 = vmatprep.subr.bf16.mxu0 %v2219_v29  ;;  %2254 = vmatpush3.bf16.msra.mxu1 %v2253_v33  ;;  %v2235_v36 = vpack.c.bf16 %v3403_v8, %v3371_v28  ;;  %v2577_v47 = vpack.i.bf16 %v3517_v49, %v3522_v37  ;;  %v2237_v28 = vpack.c.bf16 %v3398_v2, %v3366_v23  ;;  %v37_v8 = vld [vmem:[%s5007_s0 + $0x78] sm:$0xff]  ;;  %v134_v23 = vld [vmem:[%s5007_s0 + $0x380] sm:$0xff] }
  0x21   :  { %2564 = vxpose.xlu1.b32.cont [8/16] (narrow) %v2563_v55, 64  ;;  %v3386_v55 = vld [vmem:[%s5007_s0 + $0x158] sm:$0xff]  ;;  %2256 = vmatprep.subr.bf16.mxu1 %v2255_v12 }
  0x22   :  { %v2269_v2 = vpack.c.bf16 %v3386_v55, %v3356_v17  ;;  %v135_v17 = vld [vmem:[%s5007_s0 + $0x388] sm:$0xff] }
  0x23   :  { %2492 = vxpose.xlu0.b32.cont [8/16] (narrow) %v2491_v56, 64  ;;  %v2571_v56 = vpack.i.bf16 %v3386_v55, %v3391_v4  ;;  %2222 = vmatpush3.bf16.msra.mxu0 %v2221_v9  ;;  %v51_v9 = vld [vmem:[%s5007_s0 + $0xe8] sm:$0xff] }
  0x24   :  { %2224 = vmatprep.subr.bf16.mxu0 %v2223_v20  ;;  %v53_v20 = vld [vmem:[%s5007_s0 + $0xf8] sm:$0xff] }
  0x25   :  { %2566 = vxpose.xlu1.b32.cont [9/16] (narrow) %v2565_v61, 64  ;;  %v3418_v61 = vld [vmem:[%s5007_s0 + $0x160] sm:$0xff]  ;;  %v2507_v63 = vpack.i.bf16 %v53_v20, %v37_v8 }
  0x26   :  { %v2573_v34 = vpack.i.bf16 %v3418_v61, %v3435_v6  ;;  %v2273_v12 = vpack.c.bf16 %v3488_v39, %v3418_v61 }
  0x27   :  { %2494 = vxpose.xlu0.b32.cont [9/16] (narrow) %v2493_v62, 64  ;;  %v2225_v62 = vpack.c.bf16 %v3210_v32, %v3186_v26  ;;  %v3472_v26 = vld [vmem:[%s5007_s0 + $0x510] sm:$0xff]  ;;  %v3477_v32 = vld [vmem:[%s5007_s0 + $0x518] sm:$0xff] }
  0x28   :  { %5070 = vst [vmem:[#allocation10_spill] sm:$0xff] %v3472_v26 }
  0x29   :  { %2568 = vxpose.xlu1.b32.cont [10/16] (narrow) %v2567_v11, 64  ;;  %v3456_v11 = vld [vmem:[%s5007_s0 + $0x60] sm:$0xff]  ;;  %2226 = vmatpush3.bf16.msra.mxu0 %v2225_v62  ;;  %v2243_v62 = vpack.c.bf16 %v53_v20, %v52_v21 }
  0x2a   :  { %2228 = vmatprep.subr.bf16.mxu0 %v2227_v18 }
  0x2b   :  { %2496 = vxpose.xlu0.b32.cont [10/16] (narrow) %v2495_v16, 64  ;;  %v3461_v16 = vld [vmem:[%s5007_s0 + $0xe0] sm:$0xff] }
  0x2c   :  { %v2501_v31 = vpack.i.bf16 %v3461_v16, %v3456_v11 }
  0x2d   :  { %2570 = vxpose.xlu1.b32.cont [11/16] (narrow) %v2569_v35, 64  ;;  %v2257_v35 = vpack.c.bf16 %v3200_v30, %v3176_v24  ;;  %v2231_v24 = vpack.c.bf16 %v3347_v10, %v3323_v60  ;;  %v2575_v30 = vpack.i.bf16 %v3488_v39, %v3493_v51  ;;  %v2233_v60 = vpack.c.bf16 %v3342_v7, %v3318_v59  ;;  %v3531_v10 = vld [vmem:[%s5007_s0 + $0x70] sm:$0xff]  ;;  %v3546_v7 = vld [vmem:[%s5007_s0 + $0x178] sm:$0xff] }
  0x2e   :  { %2230 = vmatpush3.bf16.msra.mxu0 %v2229_v43  ;;  %v2505_v59 = vpack.i.bf16 %v52_v21, %v3531_v10  ;;  %v2579_v57 = vpack.i.bf16 %v3546_v7, %v85_v58  ;;  %v2245_v18 = vpack.c.bf16 %v37_v8, %v3531_v10 }
  0x2f   :  { %2498 = vxpose.xlu0.b32.cont [11/16] (narrow) %v2497_v46, 64  ;;  %v3502_v46 = vld [vmem:[%s5007_s0 + $0x68] sm:$0xff]  ;;  %2258 = vmatpush3.bf16.msra.mxu1 %v2257_v35 }
  0x30   :  { %v2503_v38 = vpack.i.bf16 %v51_v9, %v3502_v46  ;;  %2260 = vmatprep.subr.bf16.mxu1 %v2259_v15  ;;  %2232 = vmatprep.subr.bf16.mxu0 %v2231_v24  ;;  %v2241_v33 = vpack.c.bf16 %v3502_v46, %v3456_v11  ;;  %v3585_v11 = vld [vmem:[%s5007_s0 + $0x700] sm:$0xff] }
  0x31   :  { %2572 = vxpose.xlu1.b32.cont [12/16] (narrow) %v2571_v56, 64  ;;  %v2267_v56 = vpack.c.bf16 %v3391_v4, %v3361_v22  ;;  %v102_v22 = vld [vmem:[%s5007_s0 + $0x280] sm:$0xff]  ;;  %v2271_v4 = vpack.c.bf16 %v3493_v51, %v3435_v6  ;;  %5071 = vst [vmem:[#allocation11_spill] sm:$0xff] %v3585_v11  ;;  %v3590_v6 = vld [vmem:[%s5007_s0 + $0x708] sm:$0xff]  ;;  %v2275_v51 = vpack.c.bf16 %v85_v58, %v3522_v37 }
  0x32   :  { %2234 = vmatpush3.bf16.msra.mxu0 %v2233_v60  ;;  %v2621_v55 = vpack.i.bf16 %v3258_v44, %v102_v22  ;;  %5072 = vst [vmem:[#allocation12_spill] sm:$0xff] %v3590_v6 }
  0x33   :  { %2500 = vxpose.xlu0.b32.cont [12/16] (narrow) %v2499_v5, 64  ;;  %2262 = vmatpush3.bf16.msra.mxu1 %v2261_v48  ;;  %v2239_v5 = vpack.c.bf16 %v51_v9, %v3461_v16  ;;  %v2693_v16 = vpack.i.bf16 %v3244_v40, %v134_v23 }
  0x34   :  { %2264 = vmatprep.subr.bf16.mxu1 %v2263_v14  ;;  %2236 = vmatprep.subr.bf16.mxu0 %v2235_v36 }
  0x35   :  { %2574 = vxpose.xlu1.b32.cont [13/16] (narrow) %v2573_v34, 64  ;;  %v103_v34 = vld [vmem:[%s5007_s0 + $0x288] sm:$0xff] }
  0x36   :  { %2238 = vmatpush3.bf16.msra.mxu0 %v2237_v28  ;;  %v2279_v35 = vpack.c.bf16 %v103_v34, %v102_v22 }
  0x37   :  { %2502 = vxpose.xlu0.b32.cont [13/16] (narrow) %v2501_v31, 64  ;;  %2266 = vmatpush3.bf16.msra.mxu1 %v2265_v3 }
  0x38   :  { %2268 = vmatprep.subr.bf16.mxu1 %v2267_v56  ;;  %2240 = vmatprep.subr.bf16.mxu0 %v2239_v5 }
  0x39   :  { %2576 = vxpose.xlu1.b32.cont [14/16] (narrow) %v2575_v30, 64 }
  0x3a   :  { %2242 = vmatpush3.bf16.msra.mxu0 %v2241_v33 }
  0x3b   :  { %2504 = vxpose.xlu0.b32.cont [14/16] (narrow) %v2503_v38, 64  ;;  %2270 = vmatpush3.bf16.msra.mxu1 %v2269_v2 }
  0x3c   :  { %2272 = vmatprep.subr.bf16.mxu1 %v2271_v4  ;;  %2244 = vmatprep.subr.bf16.mxu0 %v2243_v62 }
  0x3d   :  { %2578 = vxpose.xlu1.b32.cont [15/16] (narrow) %v2577_v47, 64 }
  0x3f   :  { %2506 = vxpose.xlu0.b32.cont [15/16] (narrow) %v2505_v59, 64 }
  0x41   :  { %2580 = vxpose.xlu1.b32.end [16/16] (narrow) %v2579_v57, 64 }
  0x43   :  { %2508 = vxpose.xlu0.b32.end [16/16] (narrow) %v2507_v63, 64 }
  0x44   :  { %6 = vsyncpa [#allocation4], 0  ;;  %v2695_v61 = vpack.i.bf16 %v3249_v41, %v135_v17  ;;  %v3605_v39 = vld [vmem:[%s5007_s0 + $0x600] sm:$0xff]  ;;  %v3610_v43 = vld [vmem:[%s5007_s0 + $0x608] sm:$0xff]  ;;  %v2623_v46 = vpack.i.bf16 %v3263_v45, %v103_v34  ;;  %v2277_v24 = vpack.c.bf16 %v3546_v7, %v3517_v49  ;;  %2274 = vmatpush3.bf16.msra.mxu1 %v2273_v12  ;;  %2246 = vmatpush3.bf16.msra.mxu0 %v2245_v18  ;;  %vm13_vm0 = vcmask 523264   ;;  %s3053_s2 = scalar_lea.hbm %s5008_s1, 16 }
  0x45   :  { %2694 = vxpose.xlu1.b32.start [1/16] (narrow) %v2693_v16, 64  ;;  %5073 = vst [vmem:[#allocation13_spill] sm:$0xff] %v3605_v39  ;;  %5074 = vst [vmem:[#allocation14_spill] sm:$0xff] %v3610_v43  ;;  %v3616_v9 = vld [vmem:[%s5007_s0 + $0x390] sm:$0xff]  ;;  %v2311_v37 = vpack.c.bf16 %v135_v17, %v134_v23  ;;  %2276 = vmatprep.subr.bf16.mxu1 %v2275_v51  ;;  %v3639_v60 = vld [vmem:[%s5007_s0 + $0x398] sm:$0xff]  ;;  %p3054_p0 = scmp.ne.s32.totalorder %s5008_s1, %s3053_s2  ;;  %p3057_p1 = scmp.lt.u32.totalorder %s3053_s2, %s5008_s1 }
  0x46   :  { %v3625_v30 = vld [vmem:[%s5007_s0 + $0x210] sm:$0xff]  ;;  %2280 = vmatprep.subr.bf16.mxu0 %v2279_v35  ;;  %v2697_v48 = vpack.i.bf16 %v3292_v52, %v3616_v9  ;;  %v3644_v10 = vld [vmem:[%s5007_s0 + $0x218] sm:$0xff]  ;;  %v2699_v14 = vpack.i.bf16 %v3297_v53, %v3639_v60  ;;  %v3658_v47 = vld [vmem:[%s5007_s0 + $0x320] sm:$0xff] }
  0x47   :  { %2622 = vxpose.xlu0.b32.start [1/16] (narrow) %v2621_v55, 64  ;;  %v3630_v38 = vld [vmem:[%s5007_s0 + $0x290] sm:$0xff]  ;;  %v3649_v21 = vld [vmem:[%s5007_s0 + $0x298] sm:$0xff]  ;;  %v3663_v59 = vld [vmem:[%s5007_s0 + $0x3a0] sm:$0xff]  ;;  %p3059_p2 = pnand %p3057_p1, %p3054_p0 }
  0x48   :  { %v2625_v49 = vpack.i.bf16 %v3625_v30, %v3630_v38  ;;  %2278 = vmatpush3.bf16.msra.mxu1 %v2277_v24  ;;  %v2627_v36 = vpack.i.bf16 %v3644_v10, %v3649_v21  ;;  %v3668_v7 = vld [vmem:[%s5007_s0 + $0x220] sm:$0xff]  ;;  %v2701_v3 = vpack.i.bf16 %v3658_v47, %v3663_v59  ;;  %v3682_v8 = vld [vmem:[%s5007_s0 + $0x328] sm:$0xff]  ;;  %v3706_v23 = vld [vmem:[%s5007_s0 + $0x330] sm:$0xff] }
  0x49   :  { %2696 = vxpose.xlu1.b32.cont [2/16] (narrow) %v2695_v61, 64  ;;  %2312 = vmatprep.subr.bf16.mxu1 %v2311_v37  ;;  %v3673_v58 = vld [vmem:[%s5007_s0 + $0x2a0] sm:$0xff]  ;;  %v3687_v20 = vld [vmem:[%s5007_s0 + $0x3a8] sm:$0xff]  ;;  %v3711_v2 = vld [vmem:[%s5007_s0 + $0x3b0] sm:$0xff] }
  0x4a   :  { %v2629_v28 = vpack.i.bf16 %v3668_v7, %v3673_v58  ;;  %v3692_v56 = vld [vmem:[%s5007_s0 + $0x228] sm:$0xff]  ;;  %v2703_v57 = vpack.i.bf16 %v3682_v8, %v3687_v20  ;;  %v3716_v33 = vld [vmem:[%s5007_s0 + $0x230] sm:$0xff]  ;;  %v2705_v4 = vpack.i.bf16 %v3706_v23, %v3711_v2  ;;  %v3730_v16 = vld [vmem:[%s5007_s0 + $0x338] sm:$0xff] }
  0x4b   :  { %2624 = vxpose.xlu0.b32.cont [2/16] (narrow) %v2623_v46, 64  ;;  %v3697_v5 = vld [vmem:[%s5007_s0 + $0x2a8] sm:$0xff]  ;;  %v3721_v22 = vld [vmem:[%s5007_s0 + $0x2b0] sm:$0xff]  ;;  %v3735_v17 = vld [vmem:[%s5007_s0 + $0x3b8] sm:$0xff] }
  0x4c   :  { %v2631_v63 = vpack.i.bf16 %v3692_v56, %v3697_v5  ;;  %v2633_v62 = vpack.i.bf16 %v3716_v33, %v3721_v22  ;;  %v3740_v55 = vld [vmem:[%s5007_s0 + $0x238] sm:$0xff]  ;;  %v2707_v18 = vpack.i.bf16 %v3730_v16, %v3735_v17  ;;  %v3754_v51 = vld [vmem:[%s5007_s0 + $0x340] sm:$0xff]  ;;  %v3874_v42 = vld [vmem:[%s5007_s0 + $0x368] sm:$0xff] }
  0x4d   :  { %2698 = vxpose.xlu1.b32.cont [3/16] (narrow) %v2697_v48, 64  ;;  %v3745_v12 = vld [vmem:[%s5007_s0 + $0x2b8] sm:$0xff]  ;;  %v3759_v35 = vld [vmem:[%s5007_s0 + $0x3c0] sm:$0xff]  ;;  %v3778_v48 = vld [vmem:[%s5007_s0 + $0x348] sm:$0xff]  ;;  %5077 = vst [vmem:[#allocation17_spill] sm:$0xff] %v3874_v42 }
  0x4e   :  { %v2635_v34 = vpack.i.bf16 %v3740_v55, %v3745_v12  ;;  %v3764_v61 = vld [vmem:[%s5007_s0 + $0x240] sm:$0xff]  ;;  %v2709_v24 = vpack.i.bf16 %v3754_v51, %v3759_v35  ;;  %v3879_v50 = vld [vmem:[%s5007_s0 + $0x3e8] sm:$0xff]  ;;  %v3898_v39 = vld [vmem:[%s5007_s0 + $0x370] sm:$0xff] }
  0x4f   :  { %2626 = vxpose.xlu0.b32.cont [3/16] (narrow) %v2625_v49, 64  ;;  %v3769_v46 = vld [vmem:[%s5007_s0 + $0x2c0] sm:$0xff]  ;;  %v3783_v49 = vld [vmem:[%s5007_s0 + $0x3c8] sm:$0xff]  ;;  %5078 = vst [vmem:[#allocation18_spill] sm:$0xff] %v3879_v50  ;;  %v2719_v43 = vpack.i.bf16 %v3874_v42, %v3879_v50  ;;  %5080 = vst [vmem:[#allocation20_spill] sm:$0xff] %v3898_v39 }
  0x50   :  { %v2637_v37 = vpack.i.bf16 %v3764_v61, %v3769_v46  ;;  %v3850_v25 = vld [vmem:[%s5007_s0 + $0x360] sm:$0xff]  ;;  %v3903_v11 = vld [vmem:[%s5007_s0 + $0x3f0] sm:$0xff]  ;;  %v3922_v50 = vld [vmem:[%s5007_s0 + $0x378] sm:$0xff] }
  0x51   :  { %2700 = vxpose.xlu1.b32.cont [4/16] (narrow) %v2699_v14, 64  ;;  %v3788_v14 = vld [vmem:[%s5007_s0 + $0x248] sm:$0xff]  ;;  %5075 = vst [vmem:[#allocation15_spill] sm:$0xff] %v3850_v25  ;;  %v3855_v13 = vld [vmem:[%s5007_s0 + $0x3e0] sm:$0xff]  ;;  %5081 = vst [vmem:[#allocation21_spill] sm:$0xff] %v3903_v11  ;;  %v2721_v42 = vpack.i.bf16 %v3898_v39, %v3903_v11 }
  0x52   :  { %5076 = vst [vmem:[#allocation16_spill] sm:$0xff] %v3855_v13  ;;  %v2717_v29 = vpack.i.bf16 %v3850_v25, %v3855_v13  ;;  %5084 = vst [vmem:[#allocation24_spill] sm:$0xff] %v3922_v50  ;;  %v3927_v13 = vld [vmem:[%s5007_s0 + $0x3f8] sm:$0xff] }
  0x53   :  { %2628 = vxpose.xlu0.b32.cont [4/16] (narrow) %v2627_v36, 64  ;;  %v3793_v36 = vld [vmem:[%s5007_s0 + $0x2c8] sm:$0xff]  ;;  %5085 = vst [vmem:[#allocation25_spill] sm:$0xff] %v3927_v13  ;;  %v2723_v39 = vpack.i.bf16 %v3922_v50, %v3927_v13 }
  0x54   :  { %v3963_v50 = vld [vmem:[%s5007_s0 + $0x488] sm:$0xff] }
  0x55   :  { %2702 = vxpose.xlu1.b32.cont [5/16] (narrow) %v2701_v3, 64  ;;  %v2711_v3 = vpack.i.bf16 %v3778_v48, %v3783_v49  ;;  %5091 = vst [vmem:[#allocation31_spill] sm:$0xff] %v3963_v50 }
  0x57   :  { %2630 = vxpose.xlu0.b32.cont [5/16] (narrow) %v2629_v28, 64  ;;  %v2639_v28 = vpack.i.bf16 %v3788_v14, %v3793_v36 }
  0x59   :  { %2704 = vxpose.xlu1.b32.cont [6/16] (narrow) %v2703_v57, 64  ;;  %v3802_v57 = vld [vmem:[%s5007_s0 + $0x350] sm:$0xff] }
  0x5b   :  { %2632 = vxpose.xlu0.b32.cont [6/16] (narrow) %v2631_v63, 64  ;;  %v3807_v63 = vld [vmem:[%s5007_s0 + $0x3d0] sm:$0xff] }
  0x5d   :  { %2706 = vxpose.xlu1.b32.cont [7/16] (narrow) %v2705_v4, 64  ;;  %v3812_v4 = vld [vmem:[%s5007_s0 + $0x250] sm:$0xff] }
  0x5f   :  { %2634 = vxpose.xlu0.b32.cont [7/16] (narrow) %v2633_v62, 64  ;;  %v3817_v62 = vld [vmem:[%s5007_s0 + $0x2d0] sm:$0xff] }
  0x61   :  { %2708 = vxpose.xlu1.b32.cont [8/16] (narrow) %v2707_v18, 64  ;;  %v2713_v18 = vpack.i.bf16 %v3802_v57, %v3807_v63 }
  0x63   :  { %2636 = vxpose.xlu0.b32.cont [8/16] (narrow) %v2635_v34, 64  ;;  %v2641_v34 = vpack.i.bf16 %v3812_v4, %v3817_v62 }
  0x65   :  { %2710 = vxpose.xlu1.b32.cont [9/16] (narrow) %v2709_v24, 64  ;;  %v3826_v24 = vld [vmem:[%s5007_s0 + $0x358] sm:$0xff] }
  0x67   :  { %2638 = vxpose.xlu0.b32.cont [9/16] (narrow) %v2637_v37, 64  ;;  %v3831_v37 = vld [vmem:[%s5007_s0 + $0x3d8] sm:$0xff] }
  0x68   :  { %v2715_v15 = vpack.i.bf16 %v3826_v24, %v3831_v37 }
  0x69   :  { %2712 = vxpose.xlu1.b32.cont [10/16] (narrow) %v2711_v3, 64  ;;  %v3836_v3 = vld [vmem:[%s5007_s0 + $0x258] sm:$0xff] }
  0x6b   :  { %2640 = vxpose.xlu0.b32.cont [10/16] (narrow) %v2639_v28, 64  ;;  %v3841_v28 = vld [vmem:[%s5007_s0 + $0x2d8] sm:$0xff] }
  0x6c   :  { %v2643_v31 = vpack.i.bf16 %v3836_v3, %v3841_v28 }
  0x6d   :  { %2714 = vxpose.xlu1.b32.cont [11/16] (narrow) %v2713_v18, 64  ;;  %v3860_v18 = vld [vmem:[%s5007_s0 + $0x260] sm:$0xff] }
  0x6f   :  { %2642 = vxpose.xlu0.b32.cont [11/16] (narrow) %v2641_v34, 64  ;;  %v3865_v34 = vld [vmem:[%s5007_s0 + $0x2e0] sm:$0xff] }
  0x70   :  { %v2645_v54 = vpack.i.bf16 %v3860_v18, %v3865_v34 }
  0x71   :  { %2716 = vxpose.xlu1.b32.cont [12/16] (narrow) %v2715_v15, 64  ;;  %v3884_v15 = vld [vmem:[%s5007_s0 + $0x268] sm:$0xff] }
  0x72   :  { %5079 = vst [vmem:[#allocation19_spill] sm:$0xff] %v3884_v15 }
  0x73   :  { %2644 = vxpose.xlu0.b32.cont [12/16] (narrow) %v2643_v31, 64  ;;  %v3889_v31 = vld [vmem:[%s5007_s0 + $0x2e8] sm:$0xff] }
  0x74   :  { %v2647_v6 = vpack.i.bf16 %v3884_v15, %v3889_v31 }
  0x75   :  { %2718 = vxpose.xlu1.b32.cont [13/16] (narrow) %v2717_v29, 64  ;;  %v3908_v29 = vld [vmem:[%s5007_s0 + $0x270] sm:$0xff] }
  0x76   :  { %5082 = vst [vmem:[#allocation22_spill] sm:$0xff] %v3908_v29 }
  0x77   :  { %2646 = vxpose.xlu0.b32.cont [13/16] (narrow) %v2645_v54, 64  ;;  %v3913_v54 = vld [vmem:[%s5007_s0 + $0x2f0] sm:$0xff] }
  0x78   :  { %5083 = vst [vmem:[#allocation23_spill] sm:$0xff] %v3913_v54  ;;  %v2649_v25 = vpack.i.bf16 %v3908_v29, %v3913_v54  ;;  %v3946_v29 = vld [vmem:[%s5007_s0 + $0x580] sm:$0xff] }
  0x79   :  { %2720 = vxpose.xlu1.b32.cont [14/16] (narrow) %v2719_v43, 64  ;;  %v3932_v43 = vld [vmem:[%s5007_s0 + $0x278] sm:$0xff]  ;;  %5088 = vst [vmem:[#allocation28_spill] sm:$0xff] %v3946_v29  ;;  %v3951_v54 = vld [vmem:[%s5007_s0 + $0x480] sm:$0xff] }
  0x7a   :  { %5086 = vst [vmem:[#allocation26_spill] sm:$0xff] %v3932_v43  ;;  %5089 = vst [vmem:[#allocation29_spill] sm:$0xff] %v3951_v54  ;;  %v2765_v13 = vpack.i.bf16 %v3442_v19, %v3951_v54 }
  0x7b   :  { %2648 = vxpose.xlu0.b32.cont [14/16] (narrow) %v2647_v6, 64  ;;  %v3937_v6 = vld [vmem:[%s5007_s0 + $0x2f8] sm:$0xff] }
  0x7c   :  { %5087 = vst [vmem:[#allocation27_spill] sm:$0xff] %v3937_v6  ;;  %v2651_v11 = vpack.i.bf16 %v3932_v43, %v3937_v6 }
  0x7d   :  { %2722 = vxpose.xlu1.b32.cont [15/16] (narrow) %v2721_v42, 64  ;;  %v2837_v42 = vpack.i.bf16 %v3423_v0, %v3946_v29  ;;  %v3974_v29 = vld [vmem:[%s5007_s0 + $0x590] sm:$0xff] }
  0x7e   :  { %5092 = vst [vmem:[#allocation32_spill] sm:$0xff] %v3974_v29 }
  0x7f   :  { %2650 = vxpose.xlu0.b32.cont [15/16] (narrow) %v2649_v25, 64  ;;  %v3958_v25 = vld [vmem:[%s5007_s0 + $0x588] sm:$0xff] }
  0x80   :  { %5090 = vst [vmem:[#allocation30_spill] sm:$0xff] %v3958_v25 }
  0x81   :  { %2724 = vxpose.xlu1.b32.end [16/16] (narrow) %v2723_v39, 64  ;;  %v2839_v39 = vpack.i.bf16 %v3428_v1, %v3958_v25  ;;  %v3984_v1 = vld [vmem:[%s5007_s0 + $0x490] sm:$0xff]  ;;  %v2285_v25 = vpack.c.bf16 %v3644_v10, %v3625_v30  ;;  %v4002_v30 = vld [vmem:[%s5007_s0 + $0x418] sm:$0xff]  ;;  %v5094_v10 = vpack.c.bf16 %v3263_v45, %v3258_v44 }
  0x83   :  { %2652 = vxpose.xlu0.b32.end [16/16] (narrow) %v2651_v11, 64  ;;  %v2767_v11 = vpack.i.bf16 %v3447_v27, %v3963_v50  ;;  %v2283_v27 = vpack.c.bf16 %v3649_v21, %v3630_v38 }
  0x85   :  { %2838 = vxpose.xlu1.b32.start [1/16] (narrow) %v2837_v42, 64  ;;  %v2581_v0 = vpop.trf.xlu1  ;;  %v3979_v42 = vld [vmem:[%s5007_s0 + $0x410] sm:$0xff] }
  0x86   :  { %v2582_v6 = vunpack.i.l.bf16 %v2581_v0  ;;  %v2585_v15 = vunpack.i.h.bf16 %v2581_v0  ;;  %5093 = vst [vmem:[#allocation33_spill] sm:$0xff] %v3979_v42  ;;  %v2841_v0 = vpack.i.bf16 %v3472_v26, %v3974_v29  ;;  %v2769_v54 = vpack.i.bf16 %v3979_v42, %v3984_v1 }
  0x87   :  { %2766 = vxpose.xlu0.b32.start [1/16] (narrow) %v2765_v13, 64  ;;  %v2509_v43 = vpop.trf.xlu0  ;;  %v2315_v26 = vpack.c.bf16 %v3639_v60, %v3616_v9  ;;  %v4041_v9 = vld [vmem:[%s5007_s0 + $0x4a0] sm:$0xff] }
  0x88   :  { %v2513_v19 = vunpack.i.h.bf16 %v2509_v43  ;;  %v2510_v13 = vunpack.i.l.bf16 %v2509_v43  ;;  %967 = vmatprep.mubr.f32.mxu1 %v2582_v6  ;;  %v3997_v43 = vld [vmem:[%s5007_s0 + $0x598] sm:$0xff] }
  0x89   :  { %2840 = vxpose.xlu1.b32.cont [2/16] (narrow) %v2839_v39, 64  ;;  %v2586_v50 = vpop.trf.xlu1  ;;  %968 = vmatmul.mubr.f32.vlgmr.msra.gmra.mrb[0].mxu1 %v2585_v15  ;;  %v2843_v29 = vpack.i.bf16 %v3477_v32, %v3997_v43 }
  0x8a   :  { %862 = vmatprep.mubr.f32.mxu0 %v2513_v19  ;;  %v2587_v38 = vunpack.i.l.bf16 %v2586_v50  ;;  %v4007_v19 = vld [vmem:[%s5007_s0 + $0x498] sm:$0xff] }
  0x8b   :  { %2768 = vxpose.xlu0.b32.cont [2/16] (narrow) %v2767_v11, 64  ;;  %v2514_v6 = vpop.trf.xlu0  ;;  %863 = vmatmul.mubr.f32.vlgmr.msra.gmra.mrb[0].mxu0 %v2510_v13  ;;  %v5095_v11 = vpack.c.bf16 %v3249_v41, %v3244_v40  ;;  %v2590_v13 = vunpack.i.h.bf16 %v2586_v50  ;;  %v2771_v44 = vpack.i.bf16 %v4002_v30, %v4007_v19  ;;  %v4024_v40 = vld [vmem:[%s5007_s0 + $0x520] sm:$0xff]  ;;  %v2287_v50 = vpack.c.bf16 %v3697_v5, %v3673_v58 }
  0x8c   :  { %2282 = vmatpush3.bf16.msra.mxu0 %v5094_v10  ;;  %v2518_v21 = vunpack.i.h.bf16 %v2514_v6  ;;  %v2515_v39 = vunpack.i.l.bf16 %v2514_v6  ;;  %v4029_v41 = vld [vmem:[%s5007_s0 + $0x5a0] sm:$0xff]  ;;  %972 = vmatprep.mubr.f32.mxu1 %v2587_v38  ;;  %v4069_v10 = vld [vmem:[%s5007_s0 + $0x428] sm:$0xff] }
  0x8d   :  { %2314 = vmatpush3.bf16.msra.mxu1 %v5095_v11  ;;  %2284 = vmatprep.subr.bf16.mxu0 %v2283_v27  ;;  %v2591_v42 = vpop.trf.xlu1  ;;  %v4036_v27 = vld [vmem:[%s5007_s0 + $0x420] sm:$0xff]  ;;  %v2845_v5 = vpack.i.bf16 %v4024_v40, %v4029_v41 }
  0x8e   :  { %2842 = vxpose.xlu1.b32.cont [3/16] (narrow) %v2841_v0, 64  ;;  %867 = vmatprep.mubr.f32.mxu0 %v2518_v21  ;;  %v2592_v58 = vunpack.i.l.bf16 %v2591_v42  ;;  %v2595_v6 = vunpack.i.h.bf16 %v2591_v42  ;;  %v2773_v38 = vpack.i.bf16 %v4036_v27, %v4041_v9  ;;  %v2321_v42 = vpack.c.bf16 %v3682_v8, %v3658_v47  ;;  %v4074_v21 = vld [vmem:[%s5007_s0 + $0x4a8] sm:$0xff] }
  0x8f   :  { %2770 = vxpose.xlu0.b32.cont [3/16] (narrow) %v2769_v54, 64  ;;  %v2519_v45 = vpop.trf.xlu0  ;;  %868 = vmatmul.mubr.f32.gmra.mrb[2].mxu0 %v2515_v39  ;;  %v2289_v54 = vpack.c.bf16 %v3692_v56, %v3668_v7  ;;  %v5096_v7 = vpack.c.bf16 %v3297_v53, %v3292_v52  ;;  %v2293_v39 = vpack.c.bf16 %v3740_v55, %v3716_v33  ;;  %v4097_v33 = vld [vmem:[%s5007_s0 + $0x430] sm:$0xff] }
  0x90   :  { %2286 = vmatpush3.bf16.msra.mxu0 %v2285_v25  ;;  %v2523_v60 = vunpack.i.h.bf16 %v2519_v45  ;;  %v2520_v15 = vunpack.i.l.bf16 %v2519_v45  ;;  %973 = vmatmul.mubr.f32.gmra.mrb[2].mxu1 %v2590_v13  ;;  %v4052_v25 = vld [vmem:[%s5007_s0 + $0x528] sm:$0xff]  ;;  %v2775_v11 = vpack.i.bf16 %v4069_v10, %v4074_v21  ;;  %v4087_v13 = vld [vmem:[%s5007_s0 + $0x530] sm:$0xff]  ;;  %v2323_v45 = vpack.c.bf16 %v3735_v17, %v3711_v2  ;;  %v4117_v2 = vld [vmem:[%s5007_s0 + $0x538] sm:$0xff] }
  0x91   :  { %2316 = vmatprep.subr.bf16.mxu1 %v2315_v26  ;;  %v2596_v0 = vpop.trf.xlu1  ;;  %v4057_v26 = vld [vmem:[%s5007_s0 + $0x5a8] sm:$0xff]  ;;  %2288 = vmatprep.subr.bf16.mxu0 %v2287_v50  ;;  %v4102_v55 = vld [vmem:[%s5007_s0 + $0x4b0] sm:$0xff]  ;;  %v2325_v50 = vpack.c.bf16 %v3730_v16, %v3706_v23  ;;  %v4122_v23 = vld [vmem:[%s5007_s0 + $0x5b8] sm:$0xff]  ;;  %v2295_v17 = vpack.c.bf16 %v3793_v36, %v3769_v46  ;;  %v2327_v46 = vpack.c.bf16 %v3783_v49, %v3759_v35 }
  0x92   :  { %2844 = vxpose.xlu1.b32.cont [4/16] (narrow) %v2843_v29, 64  ;;  %872 = vmatprep.mubr.f32.mxu0 %v2523_v60  ;;  %v2319_v29 = vpack.c.bf16 %v3687_v20, %v3663_v59  ;;  %v2291_v59 = vpack.c.bf16 %v3745_v12, %v3721_v22  ;;  %v2847_v47 = vpack.i.bf16 %v4052_v25, %v4057_v26  ;;  %v2597_v8 = vunpack.i.l.bf16 %v2596_v0  ;;  %v4092_v22 = vld [vmem:[%s5007_s0 + $0x5b0] sm:$0xff]  ;;  %v4156_v35 = vld [vmem:[%s5007_s0 + $0x5c0] sm:$0xff] }
  0x93   :  { %2772 = vxpose.xlu0.b32.cont [4/16] (narrow) %v2771_v44, 64  ;;  %2318 = vmatpush3.bf16.msra.mxu1 %v5096_v7  ;;  %v2524_v56 = vpop.trf.xlu0  ;;  %v2600_v44 = vunpack.i.h.bf16 %v2596_v0  ;;  %v2297_v0 = vpack.c.bf16 %v3788_v14, %v3764_v61  ;;  %v2851_v61 = vpack.i.bf16 %v4117_v2, %v4122_v23 }
  0x94   :  { %873 = vmatmul.mubr.f32.gmra.mrb[4].mxu0 %v2520_v15  ;;  %v2528_v52 = vunpack.i.h.bf16 %v2524_v56  ;;  %977 = vmatprep.mubr.f32.mxu1 %v2592_v58  ;;  %v2525_v53 = vunpack.i.l.bf16 %v2524_v56  ;;  %v2849_v15 = vpack.i.bf16 %v4087_v13, %v4092_v22 }
  0x95   :  { %2290 = vmatpush3.bf16.msra.mxu0 %v2289_v54  ;;  %978 = vmatmul.mubr.f32.gmra.mrb[4].mxu1 %v2595_v6  ;;  %v2601_v20 = vpop.trf.xlu1  ;;  %v4131_v6 = vld [vmem:[%s5007_s0 + $0x438] sm:$0xff] }
  0x96   :  { %2846 = vxpose.xlu1.b32.cont [5/16] (narrow) %v2845_v5, 64  ;;  %2320 = vmatprep.subr.bf16.mxu1 %v2319_v29  ;;  %v2777_v5 = vpack.i.bf16 %v4097_v33, %v4102_v55  ;;  %v2602_v7 = vunpack.i.l.bf16 %v2601_v20  ;;  %v2605_v56 = vunpack.i.h.bf16 %v2601_v20  ;;  %v2329_v29 = vpack.c.bf16 %v3778_v48, %v3754_v51  ;;  %v4161_v51 = vld [vmem:[%s5007_s0 + $0x440] sm:$0xff] }
  0x97   :  { %2774 = vxpose.xlu0.b32.cont [5/16] (narrow) %v2773_v38, 64  ;;  %v2529_v12 = vpop.trf.xlu0  ;;  %877 = vmatprep.mubr.f32.mxu0 %v2528_v52  ;;  %v4136_v38 = vld [vmem:[%s5007_s0 + $0x4b8] sm:$0xff]  ;;  %v4151_v52 = vld [vmem:[%s5007_s0 + $0x540] sm:$0xff] }
  0x98   :  { %2322 = vmatpush3.bf16.msra.mxu1 %v2321_v42  ;;  %878 = vmatmul.mubr.f32.gmra.mrb[6].mxu0 %v2525_v53  ;;  %v2533_v60 = vunpack.i.h.bf16 %v2529_v12  ;;  %v2530_v54 = vunpack.i.l.bf16 %v2529_v12  ;;  %v2779_v42 = vpack.i.bf16 %v4131_v6, %v4136_v38  ;;  %v4166_v48 = vld [vmem:[%s5007_s0 + $0x4c0] sm:$0xff]  ;;  %v2853_v20 = vpack.i.bf16 %v4151_v52, %v4156_v35 }
  0x99   :  { %2292 = vmatprep.subr.bf16.mxu0 %v2291_v59  ;;  %982 = vmatprep.mubr.f32.mxu1 %v2597_v8  ;;  %v4110_v58 = vpop.trf.xlu1  ;;  %v2299_v59 = vpack.c.bf16 %v3841_v28, %v3817_v62  ;;  %v2781_v62 = vpack.i.bf16 %v4161_v51, %v4166_v48  ;;  %v2331_v28 = vpack.c.bf16 %v3831_v37, %v3807_v63 }
  0x9a   :  { %2848 = vxpose.xlu1.b32.cont [6/16] (narrow) %v2847_v47, 64  ;;  %2294 = vmatpush3.bf16.msra.mxu0 %v2293_v39  ;;  %v2301_v47 = vpack.c.bf16 %v3836_v3, %v3812_v4  ;;  %v2607_v8 = vunpack.i.l.bf16 %v4110_v58  ;;  %v2610_v39 = vunpack.i.h.bf16 %v4110_v58  ;;  %v4183_v4 = vld [vmem:[%s5007_s0 + $0x548] sm:$0xff]  ;;  %v2303_v37 = vpack.c.bf16 %v3889_v31, %v3865_v34  ;;  %v4221_v34 = vld [vmem:[%s5007_s0 + $0x5d0] sm:$0xff] }
  0x9b   :  { %2776 = vxpose.xlu0.b32.cont [6/16] (narrow) %v2775_v11, 64  ;;  %v2534_v16 = vpop.trf.xlu0  ;;  %983 = vmatmul.mubr.f32.gmra.mrb[6].mxu1 %v2600_v44  ;;  %v4188_v3 = vld [vmem:[%s5007_s0 + $0x5c8] sm:$0xff]  ;;  %v2333_v44 = vpack.c.bf16 %v3826_v24, %v3802_v57  ;;  %v4226_v31 = vld [vmem:[%s5007_s0 + $0x450] sm:$0xff] }
  0x9c   :  { %2324 = vmatprep.subr.bf16.mxu1 %v2323_v45  ;;  %882 = vmatprep.mubr.f32.mxu0 %v2533_v60  ;;  %v2538_v14 = vunpack.i.h.bf16 %v2534_v16  ;;  %v2535_v53 = vunpack.i.l.bf16 %v2534_v16  ;;  %v4197_v45 = vld [vmem:[%s5007_s0 + $0x448] sm:$0xff]  ;;  %v2855_v57 = vpack.i.bf16 %v4183_v4, %v4188_v3 }
  0x9d   :  { %2326 = vmatpush3.bf16.msra.mxu1 %v2325_v50  ;;  %883 = vmatmul.mubr.f32.gmra.mrb[8].mxu0 %v2530_v54  ;;  %v4142_v36 = vpop.trf.xlu1  ;;  %v4202_v50 = vld [vmem:[%s5007_s0 + $0x4c8] sm:$0xff] }
  0x9e   :  { %2850 = vxpose.xlu1.b32.cont [7/16] (narrow) %v2849_v15, 64  ;;  %2296 = vmatprep.subr.bf16.mxu0 %v2295_v17  ;;  %v2612_v24 = vunpack.i.l.bf16 %v4142_v36  ;;  %v5097_v15 = vld [vmem:[#allocation19_spill] sm:$0xff]  ;;  %v2783_v58 = vpack.i.bf16 %v4197_v45, %v4202_v50  ;;  %v2615_v16 = vunpack.i.h.bf16 %v4142_v36  ;;  %v5098_v17 = vld [vmem:[#allocation16_spill] sm:$0xff]  ;;  %v4245_v36 = vld [vmem:[%s5007_s0 + $0x558] sm:$0xff] }
  0x9f   :  { %2778 = vxpose.xlu0.b32.cont [7/16] (narrow) %v2777_v5, 64  ;;  %v2539_v49 = vpop.trf.xlu0  ;;  %987 = vmatprep.mubr.f32.mxu1 %v2602_v7  ;;  %v2305_v54 = vpack.c.bf16 %v5097_v15, %v3860_v18  ;;  %v4216_v5 = vld [vmem:[%s5007_s0 + $0x550] sm:$0xff] }
  0xa0   :  { %2298 = vmatpush3.bf16.msra.mxu0 %v2297_v0  ;;  %988 = vmatmul.mubr.f32.gmra.mrb[8].mxu1 %v2605_v56  ;;  %v2543_v60 = vunpack.i.h.bf16 %v2539_v49  ;;  %v2540_v63 = vunpack.i.l.bf16 %v2539_v49  ;;  %v4231_v18 = vld [vmem:[%s5007_s0 + $0x4d0] sm:$0xff]  ;;  %v5099_v0 = vld [vmem:[#allocation18_spill] sm:$0xff]  ;;  %v5100_v56 = vld [vmem:[#allocation15_spill] sm:$0xff] }
  0xa1   :  { %2328 = vmatprep.subr.bf16.mxu1 %v2327_v46  ;;  %887 = vmatprep.mubr.f32.mxu0 %v2538_v14  ;;  %v4176_v11 = vpop.trf.xlu1  ;;  %v2335_v7 = vpack.c.bf16 %v5099_v0, %v5098_v17  ;;  %v5101_v46 = vld [vmem:[#allocation17_spill] sm:$0xff]  ;;  %v2785_v49 = vpack.i.bf16 %v4226_v31, %v4231_v18  ;;  %v5109_v15 = vld [vmem:[#allocation24_spill] sm:$0xff] }
  0xa2   :  { %2852 = vxpose.xlu1.b32.cont [8/16] (narrow) %v2851_v61, 64  ;;  %2330 = vmatpush3.bf16.msra.mxu1 %v2329_v29  ;;  %v2337_v61 = vpack.c.bf16 %v5101_v46, %v5100_v56  ;;  %v2857_v29 = vpack.i.bf16 %v4216_v5, %v4221_v34  ;;  %v5110_v17 = vld [vmem:[#allocation29_spill] sm:$0xff]  ;;  %v4286_v56 = vld [vmem:[%s5007_s0 + $0x5e0] sm:$0xff]  ;;  %v5113_v46 = vld [vmem:[#allocation28_spill] sm:$0xff] }
  0xa3   :  { %2780 = vxpose.xlu0.b32.cont [8/16] (narrow) %v2779_v42, 64  ;;  %v2544_v12 = vpop.trf.xlu0  ;;  %888 = vmatmul.mubr.f32.gmra.mrb[10].mxu0 %v2535_v53  ;;  %v4250_v53 = vld [vmem:[%s5007_s0 + $0x5d8] sm:$0xff] }
  0xa4   :  { %2300 = vmatprep.subr.bf16.mxu0 %v2299_v59  ;;  %992 = vmatprep.mubr.f32.mxu1 %v2607_v8  ;;  %v2548_v14 = vunpack.i.h.bf16 %v2544_v12  ;;  %v2545_v42 = vunpack.i.l.bf16 %v2544_v12  ;;  %v5102_v59 = vld [vmem:[#allocation23_spill] sm:$0xff]  ;;  %v4264_v12 = vld [vmem:[%s5007_s0 + $0x4d8] sm:$0xff] }
  0xa5   :  { %2302 = vmatpush3.bf16.msra.mxu0 %v2301_v47  ;;  %993 = vmatmul.mubr.f32.gmra.mrb[10].mxu1 %v2610_v39  ;;  %v5103_v47 = vld [vmem:[#allocation27_spill] sm:$0xff]  ;;  %v5105_v39 = vld [vmem:[#allocation26_spill] sm:$0xff] }
  0xa6   :  { %2854 = vxpose.xlu1.b32.cont [9/16] (narrow) %v2853_v20, 64  ;;  %2332 = vmatprep.subr.bf16.mxu1 %v2331_v28  ;;  %v2307_v8 = vpack.c.bf16 %v5103_v47, %v5102_v59  ;;  %v5104_v20 = vld [vmem:[#allocation22_spill] sm:$0xff]  ;;  %v4259_v28 = vld [vmem:[%s5007_s0 + $0x458] sm:$0xff]  ;;  %v4307_v47 = vld [vmem:[%s5007_s0 + $0x568] sm:$0xff] }
  0xa7   :  { %2782 = vxpose.xlu0.b32.cont [9/16] (narrow) %v2781_v62, 64  ;;  %892 = vmatprep.mubr.f32.mxu0 %v2543_v60  ;;  %v2309_v62 = vpack.c.bf16 %v5105_v39, %v5104_v20  ;;  %v2620_v60 = vunpack.i.h.bf16 %v4176_v11  ;;  %5115 = vst [vmem:[#allocation16_spill] sm:$0xff] %v4307_v47  ;;  %v4317_v20 = vld [vmem:[%s5007_s0 + $0x468] sm:$0xff] }
  0xa8   :  { %2334 = vmatpush3.bf16.msra.mxu1 %v2333_v44  ;;  %893 = vmatmul.mubr.f32.gmra.mrb[12].mxu0 %v2540_v63  ;;  %v2617_v44 = vunpack.i.l.bf16 %v4176_v11  ;;  %v5106_v63 = vld [vmem:[#allocation21_spill] sm:$0xff]  ;;  %v4281_v11 = vld [vmem:[%s5007_s0 + $0x560] sm:$0xff]  ;;  %v4322_v39 = vld [vmem:[%s5007_s0 + $0x4e8] sm:$0xff] }
  0xa9   :  { %2304 = vmatprep.subr.bf16.mxu0 %v2303_v37  ;;  %997 = vmatprep.mubr.f32.mxu1 %v2612_v24  ;;  %v5107_v37 = vld [vmem:[#allocation25_spill] sm:$0xff]  ;;  %v5108_v24 = vld [vmem:[#allocation20_spill] sm:$0xff]  ;;  %5112 = vst [vmem:[#allocation19_spill] sm:$0xff] %v4281_v11 }
  0xaa   :  { %2856 = vxpose.xlu1.b32.cont [10/16] (narrow) %v2855_v57, 64  ;;  %2306 = vmatpush3.bf16.msra.mxu0 %v2305_v54  ;;  %v2339_v57 = vpack.c.bf16 %v5107_v37, %v5106_v63  ;;  %v2341_v54 = vpack.c.bf16 %v5109_v15, %v5108_v24  ;;  %v4336_v63 = vld [vmem:[%s5007_s0 + $0x5f0] sm:$0xff] }
  0xab   :  { %2784 = vxpose.xlu0.b32.cont [10/16] (narrow) %v2783_v58, 64  ;;  %998 = vmatmul.mubr.f32.gmra.mrb[12].mxu1 %v2615_v16  ;;  %v2859_v58 = vpack.i.bf16 %v4245_v36, %v4250_v53  ;;  %v5111_v16 = vld [vmem:[#allocation31_spill] sm:$0xff]  ;;  %5118 = vst [vmem:[#allocation17_spill] sm:$0xff] %v4336_v63  ;;  %v4341_v37 = vld [vmem:[%s5007_s0 + $0x470] sm:$0xff] }
  0xac   :  { %2336 = vmatprep.subr.bf16.mxu1 %v2335_v7  ;;  %897 = vmatprep.mubr.f32.mxu0 %v2548_v14  ;;  %v2343_v0 = vpack.c.bf16 %v5111_v16, %v5110_v17  ;;  %v2787_v7 = vpack.i.bf16 %v4259_v28, %v4264_v12  ;;  %5119 = vst [vmem:[#allocation23_spill] sm:$0xff] %v4341_v37  ;;  %v4365_v17 = vld [vmem:[%s5007_s0 + $0x478] sm:$0xff] }
  0xad   :  { %2338 = vmatpush3.bf16.msra.mxu1 %v2337_v61  ;;  %898 = vmatmul.mubr.f32.gmra.mrb[14].mxu0 %v2545_v42  ;;  %v5114_v61 = vld [vmem:[#allocation30_spill] sm:$0xff]  ;;  %5123 = vst [vmem:[#allocation21_spill] sm:$0xff] %v4365_v17  ;;  %v4370_v16 = vld [vmem:[%s5007_s0 + $0x4f8] sm:$0xff] }
  0xae   :  { %2858 = vxpose.xlu1.b32.cont [11/16] (narrow) %v2857_v29, 64  ;;  %2308 = vmatprep.subr.bf16.mxu0 %v2307_v8  ;;  %v2375_v14 = vpack.c.bf16 %v5114_v61, %v5113_v46  ;;  %v4293_v29 = vld [vmem:[%s5007_s0 + $0x460] sm:$0xff]  ;;  %v4312_v8 = vld [vmem:[%s5007_s0 + $0x5e8] sm:$0xff]  ;;  %5124 = vst [vmem:[#allocation25_spill] sm:$0xff] %v4370_v16 }
  0xaf   :  { %2786 = vxpose.xlu0.b32.cont [11/16] (narrow) %v2785_v49, 64  ;;  %v4298_v42 = vld [vmem:[%s5007_s0 + $0x4e0] sm:$0xff]  ;;  %1002 = vmatprep.mubr.f32.mxu1 %v2617_v44  ;;  %v2861_v49 = vpack.i.bf16 %v4281_v11, %v4286_v56  ;;  %5116 = vst [vmem:[#allocation18_spill] sm:$0xff] %v4312_v8  ;;  %v2791_v44 = vpack.i.bf16 %v4317_v20, %v4322_v39 }
  0xb0   :  { %2310 = vmatpush3.bf16.msra.mxu0 %v2309_v62  ;;  %1003 = vmatmul.mubr.f32.gmra.mrb[14].mxu1 %v2620_v60  ;;  %v2789_v59 = vpack.i.bf16 %v4293_v29, %v4298_v42  ;;  %v2863_v62 = vpack.i.bf16 %v4307_v47, %v4312_v8  ;;  %v4331_v60 = vld [vmem:[%s5007_s0 + $0x570] sm:$0xff]  ;;  %v4379_v46 = vld [vmem:[%s5007_s0 + $0x780] sm:$0xff] }
  0xb1   :  { %2340 = vmatprep.subr.bf16.mxu1 %v2339_v57  ;;  %2344 = vmatprep.subr.bf16.mxu0 %v2343_v0  ;;  %5117 = vst [vmem:[#allocation15_spill] sm:$0xff] %v4331_v60  ;;  %v4346_v57 = vld [vmem:[%s5007_s0 + $0x4f0] sm:$0xff]  ;;  %v2865_v24 = vpack.i.bf16 %v4331_v60, %v4336_v63  ;;  %5125 = vst [vmem:[#allocation20_spill] sm:$0xff] %v4379_v46  ;;  %v4384_v61 = vld [vmem:[%s5007_s0 + $0x680] sm:$0xff] }
  0xb2   :  { %2860 = vxpose.xlu1.b32.cont [12/16] (narrow) %v2859_v58, 64  ;;  %2342 = vmatpush3.bf16.msra.mxu1 %v2341_v54  ;;  %5120 = vst [vmem:[#allocation27_spill] sm:$0xff] %v4346_v57  ;;  %v2793_v15 = vpack.i.bf16 %v4341_v37, %v4346_v57  ;;  %v4355_v54 = vld [vmem:[%s5007_s0 + $0x578] sm:$0xff]  ;;  %5126 = vst [vmem:[#allocation24_spill] sm:$0xff] %v4384_v61  ;;  %v4412_v60 = vld [vmem:[%s5007_s0 + $0x790] sm:$0xff] }
  0xb3   :  { %2788 = vxpose.xlu0.b32.cont [12/16] (narrow) %v2787_v7, 64  ;;  %2376 = vmatprep.subr.bf16.mxu1 %v2375_v14  ;;  %5121 = vst [vmem:[#allocation22_spill] sm:$0xff] %v4355_v54  ;;  %v4360_v58 = vld [vmem:[%s5007_s0 + $0x5f8] sm:$0xff]  ;;  %v2795_v7 = vpack.i.bf16 %v4365_v17, %v4370_v16  ;;  %v5127_v14 = vld [vmem:[#allocation11_spill] sm:$0xff]  ;;  %5134 = vst [vmem:[#allocation30_spill] sm:$0xff] %v4412_v60 }
  0xb4   :  { %5122 = vst [vmem:[#allocation26_spill] sm:$0xff] %v4360_v58  ;;  %v2867_v0 = vpack.i.bf16 %v4355_v54, %v4360_v58  ;;  %v4407_v54 = vld [vmem:[%s5007_s0 + $0x710] sm:$0xff]  ;;  %v5137_v58 = vld [vmem:[#allocation33_spill] sm:$0xff] }
  0xb5   :  { %5133 = vst [vmem:[#allocation28_spill] sm:$0xff] %v4407_v54  ;;  %v2349_v63 = vpack.c.bf16 %v4002_v30, %v5137_v58  ;;  %v4445_v58 = vld [vmem:[%s5007_s0 + $0x618] sm:$0xff]  ;;  %v5144_v57 = vld [vmem:[#allocation32_spill] sm:$0xff] }
  0xb6   :  { %2862 = vxpose.xlu1.b32.cont [13/16] (narrow) %v2861_v49, 64  ;;  %v2981_v49 = vpack.i.bf16 %v5127_v14, %v4379_v46  ;;  %v5132_v14 = vld [vmem:[#allocation14_spill] sm:$0xff]  ;;  %v2379_v47 = vpack.c.bf16 %v3997_v43, %v5144_v57  ;;  %v2351_v57 = vpack.c.bf16 %v4074_v21, %v4041_v9 }
  0xb7   :  { %2790 = vxpose.xlu0.b32.cont [13/16] (narrow) %v2789_v59, 64  ;;  %v4391_v59 = vld [vmem:[%s5007_s0 + $0x788] sm:$0xff] }
  0xb8   :  { %5128 = vst [vmem:[#allocation29_spill] sm:$0xff] %v4391_v59 }
  0xba   :  { %2864 = vxpose.xlu1.b32.cont [14/16] (narrow) %v2863_v62, 64  ;;  %v4396_v62 = vld [vmem:[%s5007_s0 + $0x688] sm:$0xff] }
  0xbb   :  { %2792 = vxpose.xlu0.b32.cont [14/16] (narrow) %v2791_v44, 64  ;;  %5129 = vst [vmem:[#allocation31_spill] sm:$0xff] %v4396_v62  ;;  %v5130_v44 = vld [vmem:[#allocation13_spill] sm:$0xff] }
  0xbe   :  { %2866 = vxpose.xlu1.b32.cont [15/16] (narrow) %v2865_v24, 64  ;;  %v2909_v24 = vpack.i.bf16 %v5130_v44, %v4384_v61 }
  0xbf   :  { %2794 = vxpose.xlu0.b32.cont [15/16] (narrow) %v2793_v15, 64  ;;  %v5131_v15 = vld [vmem:[#allocation12_spill] sm:$0xff] }
  0xc2   :  { %2868 = vxpose.xlu1.b32.end [16/16] (narrow) %v2867_v0, 64  ;;  %v2983_v0 = vpack.i.bf16 %v5131_v15, %v4391_v59  ;;  %v4417_v15 = vld [vmem:[%s5007_s0 + $0x610] sm:$0xff] }
  0xc3   :  { %2796 = vxpose.xlu0.b32.end [16/16] (narrow) %v2795_v7, 64  ;;  %v2911_v7 = vpack.i.bf16 %v5132_v14, %v4396_v62  ;;  %5135 = vst [vmem:[#allocation34_spill] sm:$0xff] %v4417_v15  ;;  %v2347_v62 = vpack.c.bf16 %v4007_v19, %v3984_v1  ;;  %v4440_v1 = vld [vmem:[%s5007_s0 + $0x798] sm:$0xff] }
  0xc5   :  { %v2725_v46 = vpop.trf.xlu1 }
  0xc6   :  { %2982 = vxpose.xlu1.b32.start [1/16] (narrow) %v2981_v49, 64  ;;  %v2729_v49 = vunpack.i.h.bf16 %v2725_v46  ;;  %v2726_v61 = vunpack.i.l.bf16 %v2725_v46  ;;  %v2985_v46 = vpack.i.bf16 %v4407_v54, %v4412_v60 }
  0xc7   :  { %2910 = vxpose.xlu0.b32.start [1/16] (narrow) %v2909_v24, 64  ;;  %v2653_v44 = vpop.trf.xlu0  ;;  %v4422_v24 = vld [vmem:[%s5007_s0 + $0x690] sm:$0xff] }
  0xc8   :  { %5136 = vst [vmem:[#allocation35_spill] sm:$0xff] %v4422_v24  ;;  %v2657_v14 = vunpack.i.h.bf16 %v2653_v44  ;;  %v2654_v59 = vunpack.i.l.bf16 %v2653_v44  ;;  %1177 = vmatprep.mubr.f32.mxu1 %v2726_v61  ;;  %v2913_v37 = vpack.i.bf16 %v4417_v15, %v4422_v24  ;;  %v4435_v61 = vld [vmem:[%s5007_s0 + $0x718] sm:$0xff]  ;;  %v5141_v24 = vld [vmem:[#allocation7_spill] sm:$0xff] }
  0xc9   :  { %v2730_v17 = vpop.trf.xlu1  ;;  %v5138_v44 = vld [vmem:[#allocation9_spill] sm:$0xff]  ;;  %1178 = vmatmul.mubr.f32.vlgmr.msra.gmra.mrb[16].mxu1 %v2729_v49  ;;  %v2987_v11 = vpack.i.bf16 %v4435_v61, %v4440_v1 }
  0xca   :  { %2984 = vxpose.xlu1.b32.cont [2/16] (narrow) %v2983_v0, 64  ;;  %1072 = vmatprep.mubr.f32.mxu0 %v2654_v59  ;;  %v2731_v19 = vunpack.i.l.bf16 %v2730_v17  ;;  %v4450_v59 = vld [vmem:[%s5007_s0 + $0x698] sm:$0xff]  ;;  %v5139_v0 = vld [vmem:[#allocation8_spill] sm:$0xff]  ;;  %v2734_v16 = vunpack.i.h.bf16 %v2730_v17  ;;  %v4484_v17 = vld [vmem:[%s5007_s0 + $0x6a0] sm:$0xff] }
  0xcb   :  { %2912 = vxpose.xlu0.b32.cont [2/16] (narrow) %v2911_v7, 64  ;;  %v2658_v30 = vpop.trf.xlu0  ;;  %1073 = vmatmul.mubr.f32.vlgmr.msra.gmra.mrb[16].mxu0 %v2657_v14  ;;  %v5140_v7 = vpack.c.bf16 %v5138_v44, %v5139_v0  ;;  %v5142_v14 = vld [vmem:[#allocation6_spill] sm:$0xff]  ;;  %v2915_v49 = vpack.i.bf16 %v4445_v58, %v4450_v59  ;;  %v4512_v44 = vld [vmem:[%s5007_s0 + $0x628] sm:$0xff] }
  0xcc   :  { %v2659_v15 = vunpack.i.l.bf16 %v2658_v30  ;;  %v2662_v54 = vunpack.i.h.bf16 %v2658_v30  ;;  %v5143_v60 = vpack.c.bf16 %v5141_v24, %v5142_v14  ;;  %v4467_v24 = vld [vmem:[%s5007_s0 + $0x720] sm:$0xff]  ;;  %1182 = vmatprep.mubr.f32.mxu1 %v2731_v19  ;;  %v4517_v0 = vld [vmem:[%s5007_s0 + $0x6a8] sm:$0xff]  ;;  %v2357_v14 = vpack.c.bf16 %v4131_v6, %v4097_v33  ;;  %v4540_v33 = vld [vmem:[%s5007_s0 + $0x630] sm:$0xff] }
  0xcd   :  { %2346 = vmatpush3.bf16.msra.mxu0 %v5140_v7  ;;  %v2735_v8 = vpop.trf.xlu1  ;;  %1183 = vmatmul.mubr.f32.gmra.mrb[18].mxu1 %v2734_v16  ;;  %v2385_v16 = vpack.c.bf16 %v4052_v25, %v4024_v40  ;;  %v4545_v6 = vld [vmem:[%s5007_s0 + $0x6b0] sm:$0xff] }
  0xce   :  { %2378 = vmatpush3.bf16.msra.mxu1 %v5143_v60  ;;  %2348 = vmatprep.subr.bf16.mxu0 %v2347_v62  ;;  %v4472_v60 = vld [vmem:[%s5007_s0 + $0x7a0] sm:$0xff]  ;;  %v2736_v9 = vunpack.i.l.bf16 %v2735_v8  ;;  %v2739_v30 = vunpack.i.h.bf16 %v2735_v8  ;;  %v2383_v8 = vpack.c.bf16 %v4057_v26, %v4029_v41  ;;  %v2355_v41 = vpack.c.bf16 %v4136_v38, %v4102_v55  ;;  %v4535_v55 = vld [vmem:[%s5007_s0 + $0x7b0] sm:$0xff] }
  0xcf   :  { %2986 = vxpose.xlu1.b32.cont [3/16] (narrow) %v2985_v46, 64  ;;  %1077 = vmatprep.mubr.f32.mxu0 %v2659_v15  ;;  %v2663_v43 = vpop.trf.xlu0  ;;  %v2989_v21 = vpack.i.bf16 %v4467_v24, %v4472_v60 }
  0xd0   :  { %2914 = vxpose.xlu0.b32.cont [3/16] (narrow) %v2913_v37, 64  ;;  %1078 = vmatmul.mubr.f32.gmra.mrb[18].mxu0 %v2662_v54  ;;  %v4479_v37 = vld [vmem:[%s5007_s0 + $0x620] sm:$0xff]  ;;  %v2664_v62 = vunpack.i.l.bf16 %v2663_v43  ;;  %v2667_v15 = vunpack.i.h.bf16 %v2663_v43  ;;  %v2353_v54 = vpack.c.bf16 %v4069_v10, %v4036_v27  ;;  %v4500_v27 = vld [vmem:[%s5007_s0 + $0x7a8] sm:$0xff]  ;;  %v4530_v43 = vld [vmem:[%s5007_s0 + $0x730] sm:$0xff] }
  0xd1   :  { %2350 = vmatpush3.bf16.msra.mxu0 %v2349_v63  ;;  %2380 = vmatprep.subr.bf16.mxu1 %v2379_v47  ;;  %v2740_v46 = vpop.trf.xlu1  ;;  %v2917_v19 = vpack.i.bf16 %v4479_v37, %v4484_v17  ;;  %v4495_v63 = vld [vmem:[%s5007_s0 + $0x728] sm:$0xff]  ;;  %v5145_v10 = vld [vmem:[#allocation10_spill] sm:$0xff] }
  0xd2   :  { %1082 = vmatprep.mubr.f32.mxu0 %v2664_v62  ;;  %2352 = vmatprep.subr.bf16.mxu0 %v2351_v57  ;;  %v2991_v40 = vpack.i.bf16 %v4495_v63, %v4500_v27  ;;  %v2741_v25 = vunpack.i.l.bf16 %v2740_v46  ;;  %v2744_v57 = vunpack.i.h.bf16 %v2740_v46  ;;  %v2387_v62 = vpack.c.bf16 %v4122_v23, %v4092_v22  ;;  %v4560_v22 = vld [vmem:[%s5007_s0 + $0x738] sm:$0xff] }
  0xd3   :  { %2988 = vxpose.xlu1.b32.cont [4/16] (narrow) %v2987_v11, 64  ;;  %v5146_v11 = vpack.c.bf16 %v3477_v32, %v5145_v10  ;;  %v2668_v47 = vpop.trf.xlu0  ;;  %1187 = vmatprep.mubr.f32.mxu1 %v2736_v9  ;;  %v2993_v9 = vpack.i.bf16 %v4530_v43, %v4535_v55  ;;  %v2921_v46 = vpack.i.bf16 %v4540_v33, %v4545_v6  ;;  %v4574_v10 = vld [vmem:[%s5007_s0 + $0x638] sm:$0xff] }
  0xd4   :  { %2916 = vxpose.xlu0.b32.cont [4/16] (narrow) %v2915_v49, 64  ;;  %1083 = vmatmul.mubr.f32.gmra.mrb[20].mxu0 %v2667_v15  ;;  %v2669_v32 = vunpack.i.l.bf16 %v2668_v47  ;;  %v2672_v7 = vunpack.i.h.bf16 %v2668_v47  ;;  %v2919_v49 = vpack.i.bf16 %v4512_v44, %v4517_v0  ;;  %v2389_v15 = vpack.c.bf16 %v4117_v2, %v4087_v13  ;;  %v4565_v13 = vld [vmem:[%s5007_s0 + $0x7b8] sm:$0xff] }
  0xd5   :  { %2382 = vmatpush3.bf16.msra.mxu1 %v5146_v11  ;;  %2354 = vmatpush3.bf16.msra.mxu0 %v2353_v54  ;;  %v2745_v26 = vpop.trf.xlu1  ;;  %v2359_v23 = vpack.c.bf16 %v4202_v50, %v4166_v48  ;;  %v4579_v11 = vld [vmem:[%s5007_s0 + $0x6b8] sm:$0xff]  ;;  %v2391_v48 = vpack.c.bf16 %v4188_v3, %v4156_v35  ;;  %v4599_v35 = vld [vmem:[%s5007_s0 + $0x7c0] sm:$0xff] }
  0xd6   :  { %1188 = vmatmul.mubr.f32.gmra.mrb[20].mxu1 %v2739_v30  ;;  %2384 = vmatprep.subr.bf16.mxu1 %v2383_v8  ;;  %v2746_v47 = vunpack.i.l.bf16 %v2745_v26  ;;  %v2749_v8 = vunpack.i.h.bf16 %v2745_v26 }
  0xd7   :  { %2990 = vxpose.xlu1.b32.cont [5/16] (narrow) %v2989_v21, 64  ;;  %v2673_v38 = vpop.trf.xlu0  ;;  %1087 = vmatprep.mubr.f32.mxu0 %v2669_v32  ;;  %v2923_v32 = vpack.i.bf16 %v4574_v10, %v4579_v11 }
  0xd8   :  { %2918 = vxpose.xlu0.b32.cont [5/16] (narrow) %v2917_v19, 64  ;;  %1088 = vmatmul.mubr.f32.gmra.mrb[22].mxu0 %v2672_v7  ;;  %v2674_v54 = vunpack.i.l.bf16 %v2673_v38  ;;  %v2677_v21 = vunpack.i.h.bf16 %v2673_v38  ;;  %v2361_v19 = vpack.c.bf16 %v4197_v45, %v4161_v51  ;;  %v2995_v51 = vpack.i.bf16 %v4560_v22, %v4565_v13  ;;  %v4594_v7 = vld [vmem:[%s5007_s0 + $0x740] sm:$0xff] }
  0xd9   :  { %2386 = vmatpush3.bf16.msra.mxu1 %v2385_v16  ;;  %2356 = vmatprep.subr.bf16.mxu0 %v2355_v41  ;;  %v4553_v30 = vpop.trf.xlu1  ;;  %v2393_v16 = vpack.c.bf16 %v4183_v4, %v4151_v52  ;;  %v4604_v52 = vld [vmem:[%s5007_s0 + $0x640] sm:$0xff] }
  0xda   :  { %1192 = vmatprep.mubr.f32.mxu1 %v2741_v25  ;;  %2358 = vmatpush3.bf16.msra.mxu0 %v2357_v14  ;;  %v4609_v4 = vld [vmem:[%s5007_s0 + $0x6c0] sm:$0xff]  ;;  %v2365_v25 = vpack.c.bf16 %v4259_v28, %v4226_v31  ;;  %v2751_v26 = vunpack.i.l.bf16 %v4553_v30  ;;  %v2997_v14 = vpack.i.bf16 %v4594_v7, %v4599_v35  ;;  %v4626_v31 = vld [vmem:[%s5007_s0 + $0x748] sm:$0xff] }
  0xdb   :  { %2992 = vxpose.xlu1.b32.cont [6/16] (narrow) %v2991_v40, 64  ;;  %v2678_v2 = vpop.trf.xlu0  ;;  %1193 = vmatmul.mubr.f32.gmra.mrb[22].mxu1 %v2744_v57  ;;  %v2363_v40 = vpack.c.bf16 %v4264_v12, %v4231_v18  ;;  %v2925_v18 = vpack.i.bf16 %v4604_v52, %v4609_v4  ;;  %v4631_v28 = vld [vmem:[%s5007_s0 + $0x7c8] sm:$0xff]  ;;  %v2395_v12 = vpack.c.bf16 %v4250_v53, %v4221_v34 }
  0xdc   :  { %2920 = vxpose.xlu0.b32.cont [6/16] (narrow) %v2919_v49, 64  ;;  %2388 = vmatprep.subr.bf16.mxu1 %v2387_v62  ;;  %v2679_v45 = vunpack.i.l.bf16 %v2678_v2  ;;  %v2682_v41 = vunpack.i.h.bf16 %v2678_v2  ;;  %v2754_v49 = vunpack.i.h.bf16 %v4553_v30  ;;  %v2397_v62 = vpack.c.bf16 %v4245_v36, %v4216_v5  ;;  %v5147_v2 = vld [vmem:[#allocation18_spill] sm:$0xff] }
  0xdd   :  { %1092 = vmatprep.mubr.f32.mxu0 %v2674_v54  ;;  %2390 = vmatpush3.bf16.msra.mxu1 %v2389_v15  ;;  %v4585_v50 = vpop.trf.xlu1  ;;  %v4640_v15 = vld [vmem:[%s5007_s0 + $0x648] sm:$0xff]  ;;  %v2367_v53 = vpack.c.bf16 %v4322_v39, %v4298_v42  ;;  %v2999_v5 = vpack.i.bf16 %v4626_v31, %v4631_v28  ;;  %v4664_v42 = vld [vmem:[%s5007_s0 + $0x7d0] sm:$0xff] }
  0xde   :  { %1093 = vmatmul.mubr.f32.gmra.mrb[24].mxu0 %v2677_v21  ;;  %2360 = vmatprep.subr.bf16.mxu0 %v2359_v23  ;;  %v4645_v54 = vld [vmem:[%s5007_s0 + $0x6c8] sm:$0xff]  ;;  %v2756_v36 = vunpack.i.l.bf16 %v4585_v50  ;;  %v2369_v21 = vpack.c.bf16 %v4317_v20, %v4293_v29  ;;  %v4669_v39 = vld [vmem:[%s5007_s0 + $0x650] sm:$0xff]  ;;  %v2759_v20 = vunpack.i.h.bf16 %v4585_v50  ;;  %v2399_v23 = vpack.c.bf16 %v5147_v2, %v4286_v56  ;;  %v4688_v56 = vld [vmem:[%s5007_s0 + $0x758] sm:$0xff] }
  0xdf   :  { %2994 = vxpose.xlu1.b32.cont [7/16] (narrow) %v2993_v9, 64  ;;  %v2683_v3 = vpop.trf.xlu0  ;;  %1197 = vmatprep.mubr.f32.mxu1 %v2746_v47  ;;  %v2927_v30 = vpack.i.bf16 %v4640_v15, %v4645_v54  ;;  %v4674_v29 = vld [vmem:[%s5007_s0 + $0x6d0] sm:$0xff]  ;;  %v4693_v50 = vld [vmem:[%s5007_s0 + $0x7d8] sm:$0xff] }
  0xe0   :  { %2922 = vxpose.xlu0.b32.cont [7/16] (narrow) %v2921_v46, 64  ;;  %2362 = vmatpush3.bf16.msra.mxu0 %v2361_v19  ;;  %v2684_v9 = vunpack.i.l.bf16 %v2683_v3  ;;  %v2687_v34 = vunpack.i.h.bf16 %v2683_v3  ;;  %v4659_v46 = vld [vmem:[%s5007_s0 + $0x750] sm:$0xff]  ;;  %v5148_v19 = vld [vmem:[#allocation19_spill] sm:$0xff]  ;;  %v5151_v3 = vld [vmem:[#allocation25_spill] sm:$0xff] }
  0xe1   :  { %1198 = vmatmul.mubr.f32.gmra.mrb[24].mxu1 %v2749_v8  ;;  %2392 = vmatprep.subr.bf16.mxu1 %v2391_v48  ;;  %v4619_v38 = vpop.trf.xlu1  ;;  %v5149_v47 = vld [vmem:[#allocation16_spill] sm:$0xff] }
  0xe2   :  { %1097 = vmatprep.mubr.f32.mxu0 %v2679_v45  ;;  %2394 = vmatpush3.bf16.msra.mxu1 %v2393_v16  ;;  %v2401_v8 = vpack.c.bf16 %v5149_v47, %v5148_v19  ;;  %v2929_v16 = vpack.i.bf16 %v4669_v39, %v4674_v29  ;;  %v5160_v19 = vld [vmem:[#allocation20_spill] sm:$0xff]  ;;  %v5161_v47 = vld [vmem:[#allocation29_spill] sm:$0xff] }
  0xe3   :  { %2996 = vxpose.xlu1.b32.cont [8/16] (narrow) %v2995_v51, 64  ;;  %v2688_v57 = vpop.trf.xlu0  ;;  %1098 = vmatmul.mubr.f32.gmra.mrb[26].mxu0 %v2682_v41  ;;  %v3001_v51 = vpack.i.bf16 %v4659_v46, %v4664_v42 }
  0xe4   :  { %2924 = vxpose.xlu0.b32.cont [8/16] (narrow) %v2923_v32, 64  ;;  %2364 = vmatprep.subr.bf16.mxu0 %v2363_v40  ;;  %v2689_v48 = vunpack.i.l.bf16 %v2688_v57  ;;  %v2692_v45 = vunpack.i.h.bf16 %v2688_v57  ;;  %v5150_v32 = vld [vmem:[#allocation27_spill] sm:$0xff]  ;;  %v5154_v57 = vld [vmem:[#allocation17_spill] sm:$0xff] }
  0xe5   :  { %1202 = vmatprep.mubr.f32.mxu1 %v2751_v26  ;;  %2366 = vmatpush3.bf16.msra.mxu0 %v2365_v25  ;;  %v2371_v41 = vpack.c.bf16 %v5151_v3, %v5150_v32  ;;  %v5152_v40 = vld [vmem:[#allocation23_spill] sm:$0xff]  ;;  %v5153_v25 = vld [vmem:[#allocation21_spill] sm:$0xff] }
  0xe6   :  { %1203 = vmatmul.mubr.f32.gmra.mrb[26].mxu1 %v2754_v49  ;;  %2396 = vmatprep.subr.bf16.mxu1 %v2395_v12  ;;  %v2373_v26 = vpack.c.bf16 %v5153_v25, %v5152_v40  ;;  %v4707_v49 = vld [vmem:[%s5007_s0 + $0x6d8] sm:$0xff]  ;;  %v2764_v12 = vunpack.i.h.bf16 %v4619_v38  ;;  %v4750_v32 = vld [vmem:[%s5007_s0 + $0x768] sm:$0xff] }
  0xe7   :  { %2998 = vxpose.xlu1.b32.cont [9/16] (narrow) %v2997_v14, 64  ;;  %1102 = vmatprep.mubr.f32.mxu0 %v2684_v9  ;;  %v4702_v14 = vld [vmem:[%s5007_s0 + $0x658] sm:$0xff]  ;;  %v4755_v3 = vld [vmem:[%s5007_s0 + $0x7e8] sm:$0xff] }
  0xe8   :  { %2926 = vxpose.xlu0.b32.cont [9/16] (narrow) %v2925_v18, 64  ;;  %2398 = vmatpush3.bf16.msra.mxu1 %v2397_v62  ;;  %v2761_v18 = vunpack.i.l.bf16 %v4619_v38  ;;  %v5155_v62 = vld [vmem:[#allocation26_spill] sm:$0xff]  ;;  %v2931_v2 = vpack.i.bf16 %v4702_v14, %v4707_v49  ;;  %v4765_v40 = vld [vmem:[%s5007_s0 + $0x6e8] sm:$0xff]  ;;  %v3007_v25 = vpack.i.bf16 %v4750_v32, %v4755_v3 }
  0xe9   :  { %1103 = vmatmul.mubr.f32.gmra.mrb[28].mxu0 %v2687_v34  ;;  %2368 = vmatprep.subr.bf16.mxu0 %v2367_v53  ;;  %v2403_v9 = vpack.c.bf16 %v5155_v62, %v5154_v57  ;;  %v5156_v34 = vld [vmem:[#allocation15_spill] sm:$0xff]  ;;  %v5157_v53 = vld [vmem:[#allocation22_spill] sm:$0xff]  ;;  %v4784_v57 = vld [vmem:[%s5007_s0 + $0x670] sm:$0xff] }
  0xea   :  { %1207 = vmatprep.mubr.f32.mxu1 %v2756_v36  ;;  %2370 = vmatpush3.bf16.msra.mxu0 %v2369_v21  ;;  %v3003_v36 = vpack.i.bf16 %v4688_v56, %v4693_v50  ;;  %v5158_v21 = vld [vmem:[#allocation24_spill] sm:$0xff]  ;;  %v4724_v38 = vld [vmem:[%s5007_s0 + $0x760] sm:$0xff]  ;;  %5163 = vst [vmem:[#allocation9_spill] sm:$0xff] %v4784_v57 }
  0xeb   :  { %3000 = vxpose.xlu1.b32.cont [10/16] (narrow) %v2999_v5, 64  ;;  %1208 = vmatmul.mubr.f32.gmra.mrb[28].mxu1 %v2759_v20  ;;  %v2405_v5 = vpack.c.bf16 %v5157_v53, %v5156_v34  ;;  %v4789_v62 = vld [vmem:[%s5007_s0 + $0x6f0] sm:$0xff]  ;;  %v4798_v53 = vld [vmem:[%s5007_s0 + $0x778] sm:$0xff] }
  0xec   :  { %2928 = vxpose.xlu0.b32.cont [10/16] (narrow) %v2927_v30, 64  ;;  %2400 = vmatprep.subr.bf16.mxu1 %v2399_v23  ;;  %v5159_v30 = vld [vmem:[#allocation31_spill] sm:$0xff]  ;;  %v4729_v23 = vld [vmem:[%s5007_s0 + $0x7e0] sm:$0xff]  ;;  %5164 = vst [vmem:[#allocation8_spill] sm:$0xff] %v4789_v62  ;;  %v2937_v34 = vpack.i.bf16 %v4784_v57, %v4789_v62  ;;  %5165 = vst [vmem:[#allocation7_spill] sm:$0xff] %v4798_v53 }
  0xed   :  { %1107 = vmatprep.mubr.f32.mxu0 %v2689_v48  ;;  %2402 = vmatpush3.bf16.msra.mxu1 %v2401_v8  ;;  %v2407_v20 = vpack.c.bf16 %v5159_v30, %v5158_v21  ;;  %v2439_v8 = vpack.c.bf16 %v5161_v47, %v5160_v19  ;;  %v4736_v48 = vld [vmem:[%s5007_s0 + $0x660] sm:$0xff]  ;;  %v4813_v21 = vld [vmem:[%s5007_s0 + $0x6f8] sm:$0xff] }
  0xee   :  { %1108 = vmatmul.mubr.f32.gmra.mrb[30].mxu0 %v2692_v45  ;;  %2372 = vmatprep.subr.bf16.mxu0 %v2371_v41  ;;  %v3005_v45 = vpack.i.bf16 %v4724_v38, %v4729_v23  ;;  %v4760_v41 = vld [vmem:[%s5007_s0 + $0x668] sm:$0xff]  ;;  %5167 = vst [vmem:[#allocation32_spill] sm:$0xff] %v4813_v21  ;;  %v5168_v19 = vld [vmem:[#allocation30_spill] sm:$0xff] }
  0xef   :  { %3002 = vxpose.xlu1.b32.cont [11/16] (narrow) %v3001_v51, 64  ;;  %v4741_v51 = vld [vmem:[%s5007_s0 + $0x6e0] sm:$0xff]  ;;  %1212 = vmatprep.mubr.f32.mxu1 %v2761_v18  ;;  %v4774_v18 = vld [vmem:[%s5007_s0 + $0x770] sm:$0xff]  ;;  %v2443_v47 = vpack.c.bf16 %v4440_v1, %v5168_v19  ;;  %v2447_v1 = vpack.c.bf16 %v4500_v27, %v4472_v60  ;;  %v2449_v60 = vpack.c.bf16 %v4495_v63, %v4467_v24 }
  0xf0   :  { %2930 = vxpose.xlu0.b32.cont [11/16] (narrow) %v2929_v16, 64  ;;  %2374 = vmatpush3.bf16.msra.mxu0 %v2373_v26  ;;  %v2933_v16 = vpack.i.bf16 %v4736_v48, %v4741_v51  ;;  %v2935_v26 = vpack.i.bf16 %v4760_v41, %v4765_v40  ;;  %5162 = vst [vmem:[#allocation33_spill] sm:$0xff] %v4774_v18 }
  0xf1   :  { %1213 = vmatmul.mubr.f32.gmra.mrb[30].mxu1 %v2764_v12  ;;  %2404 = vmatprep.subr.bf16.mxu1 %v2403_v9  ;;  %v4779_v12 = vld [vmem:[%s5007_s0 + $0x7f0] sm:$0xff]  ;;  %v2417_v27 = vpack.c.bf16 %v4512_v44, %v4479_v37  ;;  %v2419_v24 = vpack.c.bf16 %v4579_v11, %v4545_v6  ;;  %v2453_v37 = vpack.c.bf16 %v4560_v22, %v4530_v43 }
  0xf2   :  { %2406 = vmatpush3.bf16.msra.mxu1 %v2405_v5  ;;  %2408 = vmatprep.subr.bf16.mxu0 %v2407_v20  ;;  %v3009_v9 = vpack.i.bf16 %v4774_v18, %v4779_v12  ;;  %v4803_v5 = vld [vmem:[%s5007_s0 + $0x7f8] sm:$0xff]  ;;  %v5171_v18 = vld [vmem:[#allocation34_spill] sm:$0xff]  ;;  %v2455_v44 = vpack.c.bf16 %v4631_v28, %v4599_v35  ;;  %v2423_v43 = vpack.c.bf16 %v4645_v54, %v4609_v4 }
  0xf3   :  { %3004 = vxpose.xlu1.b32.cont [12/16] (narrow) %v3003_v36, 64  ;;  %2440 = vmatprep.subr.bf16.mxu1 %v2439_v8  ;;  %v4808_v36 = vld [vmem:[%s5007_s0 + $0x678] sm:$0xff]  ;;  %v3011_v30 = vpack.i.bf16 %v4798_v53, %v4803_v5  ;;  %v5170_v53 = vld [vmem:[#allocation28_spill] sm:$0xff]  ;;  %v2425_v6 = vpack.c.bf16 %v4640_v15, %v4604_v52  ;;  %v2461_v52 = vpack.c.bf16 %v4688_v56, %v4659_v46 }
  0xf4   :  { %2932 = vxpose.xlu0.b32.cont [12/16] (narrow) %v2931_v2, 64  ;;  %5166 = vst [vmem:[#allocation6_spill] sm:$0xff] %v4808_v36  ;;  %v2939_v20 = vpack.i.bf16 %v4808_v36, %v4813_v21  ;;  %v5173_v36 = vld [vmem:[#allocation11_spill] sm:$0xff]  ;;  %v2429_v4 = vpack.c.bf16 %v4702_v14, %v4669_v39  ;;  %v2463_v15 = vpack.c.bf16 %v4755_v3, %v4729_v23 }
  0xf5   :  { %v2431_v46 = vpack.c.bf16 %v4765_v40, %v4741_v51  ;;  %v2465_v39 = vpack.c.bf16 %v4750_v32, %v4724_v38  ;;  %v2467_v14 = vpack.c.bf16 %v4803_v5, %v4779_v12  ;;  %v5178_v38 = vld [vmem:[#allocation8_spill] sm:$0xff] }
  0xf6   :  { %v5179_v51 = vld [vmem:[#allocation32_spill] sm:$0xff] }
  0xf7   :  { %3006 = vxpose.xlu1.b32.cont [13/16] (narrow) %v3005_v45, 64  ;;  %v5180_v32 = vld [vmem:[#allocation33_spill] sm:$0xff] }
  0xf8   :  { %2934 = vxpose.xlu0.b32.cont [13/16] (narrow) %v2933_v16, 64 }
  0xfb   :  { %3008 = vxpose.xlu1.b32.cont [14/16] (narrow) %v3007_v25, 64 }
  0xfc   :  { %2936 = vxpose.xlu0.b32.cont [14/16] (narrow) %v2935_v26, 64 }
  0xff   :  { %3010 = vxpose.xlu1.b32.cont [15/16] (narrow) %v3009_v9, 64  ;;  %v5169_v9 = vld [vmem:[#allocation35_spill] sm:$0xff] }
 0x100   :  { %2938 = vxpose.xlu0.b32.cont [15/16] (narrow) %v2937_v34, 64  ;;  %v2411_v57 = vpack.c.bf16 %v4450_v59, %v5169_v9  ;;  %v2445_v34 = vpack.c.bf16 %v4435_v61, %v5170_v53  ;;  %v5175_v61 = vld [vmem:[#allocation14_spill] sm:$0xff]  ;;  %v5176_v53 = vld [vmem:[#allocation13_spill] sm:$0xff] }
 0x101   :  { %v5177_v62 = vpack.c.bf16 %v5175_v61, %v5176_v53 }
 0x103   :  { %3012 = vxpose.xlu1.b32.end [16/16] (narrow) %v3011_v30, 64  ;;  %v2413_v30 = vpack.c.bf16 %v4445_v58, %v5171_v18  ;;  %v2415_v58 = vpack.c.bf16 %v4517_v0, %v4484_v17  ;;  %v2421_v17 = vpack.c.bf16 %v4574_v10, %v4540_v33  ;;  %v2457_v33 = vpack.c.bf16 %v4626_v31, %v4594_v7 }
 0x104   :  { %2940 = vxpose.xlu0.b32.end [16/16] (narrow) %v2939_v20, 64  ;;  %v2459_v10 = vpack.c.bf16 %v4693_v50, %v4664_v42  ;;  %v2427_v7 = vpack.c.bf16 %v4707_v49, %v4674_v29  ;;  %v2433_v29 = vpack.c.bf16 %v4760_v41, %v4736_v48  ;;  %v2435_v48 = vpack.c.bf16 %v5179_v51, %v5178_v38  ;;  %v5181_v41 = vld [vmem:[#allocation7_spill] sm:$0xff] }
 0x105   :  { %v2469_v40 = vpack.c.bf16 %v5181_v41, %v5180_v32 }
 0x106   :  { %v2869_v2 = vpop.trf.xlu1 }
 0x107   :  { %v2797_v8 = vpop.trf.xlu0  ;;  %v2873_v45 = vunpack.i.h.bf16 %v2869_v2  ;;  %v2870_v16 = vunpack.i.l.bf16 %v2869_v2 }
 0x108   :  { %v2801_v25 = vunpack.i.h.bf16 %v2797_v8  ;;  %v2798_v26 = vunpack.i.l.bf16 %v2797_v8 }
 0x109   :  { %1387 = vmatprep.mubr.f32.mxu1 %v2870_v16  ;;  %v5172_v16 = vld [vmem:[#allocation12_spill] sm:$0xff] }
 0x10a   :  { %1282 = vmatprep.mubr.f32.mxu0 %v2798_v26  ;;  %v2874_v20 = vpop.trf.xlu1  ;;  %1388 = vmatmul.mubr.f32.vlgmr.msra.gmra.mrb[32].mxu1 %v2873_v45  ;;  %v5174_v21 = vpack.c.bf16 %v5172_v16, %v5173_v36  ;;  %v2451_v36 = vpack.c.bf16 %v4565_v13, %v4535_v55  ;;  %v5183_v16 = vld [vmem:[#allocation6_spill] sm:$0xff] }
 0x10b   :  { %v2802_v19 = vpop.trf.xlu0  ;;  %1283 = vmatmul.mubr.f32.vlgmr.msra.gmra.mrb[32].mxu0 %v2801_v25  ;;  %v2875_v2 = vunpack.i.l.bf16 %v2874_v20  ;;  %v2878_v8 = vunpack.i.h.bf16 %v2874_v20 }
 0x10c   :  { %2442 = vmatpush3.bf16.msra.mxu1 %v5174_v21  ;;  %v2803_v59 = vunpack.i.l.bf16 %v2802_v19  ;;  %v2806_v9 = vunpack.i.h.bf16 %v2802_v19  ;;  %2410 = vmatpush3.bf16.msra.mxu0 %v5177_v62 }
 0x10d   :  { %2444 = vmatprep.subr.bf16.mxu1 %v2443_v47  ;;  %1392 = vmatprep.mubr.f32.mxu1 %v2875_v2 }
 0x10e   :  { %2412 = vmatprep.subr.bf16.mxu0 %v2411_v57  ;;  %1287 = vmatprep.mubr.f32.mxu0 %v2803_v59  ;;  %v2879_v18 = vpop.trf.xlu1 }
 0x10f   :  { %1393 = vmatmul.mubr.f32.gmra.mrb[34].mxu1 %v2878_v8  ;;  %v2807_v21 = vpop.trf.xlu0  ;;  %1288 = vmatmul.mubr.f32.gmra.mrb[34].mxu0 %v2806_v9  ;;  %v2880_v62 = vunpack.i.l.bf16 %v2879_v18  ;;  %v2883_v47 = vunpack.i.h.bf16 %v2879_v18  ;;  %v5182_v8 = vld [vmem:[#allocation9_spill] sm:$0xff] }
 0x110   :  { %2446 = vmatpush3.bf16.msra.mxu1 %v2445_v34  ;;  %v2808_v57 = vunpack.i.l.bf16 %v2807_v21  ;;  %v2811_v45 = vunpack.i.h.bf16 %v2807_v21  ;;  %2414 = vmatpush3.bf16.msra.mxu0 %v2413_v30  ;;  %v2437_v12 = vpack.c.bf16 %v5183_v16, %v5182_v8 }
 0x111   :  { %2448 = vmatprep.subr.bf16.mxu1 %v2447_v1  ;;  %1397 = vmatprep.mubr.f32.mxu1 %v2880_v62 }
 0x112   :  { %2416 = vmatprep.subr.bf16.mxu0 %v2415_v58  ;;  %1292 = vmatprep.mubr.f32.mxu0 %v2808_v57  ;;  %v2884_v63 = vpop.trf.xlu1 }
 0x113   :  { %1398 = vmatmul.mubr.f32.gmra.mrb[36].mxu1 %v2883_v47  ;;  %v2812_v0 = vpop.trf.xlu0  ;;  %1293 = vmatmul.mubr.f32.gmra.mrb[36].mxu0 %v2811_v45  ;;  %v2885_v55 = vunpack.i.l.bf16 %v2884_v63  ;;  %v2888_v13 = vunpack.i.h.bf16 %v2884_v63 }
 0x114   :  { %2450 = vmatpush3.bf16.msra.mxu1 %v2449_v60  ;;  %v2813_v25 = vunpack.i.l.bf16 %v2812_v0  ;;  %v2816_v26 = vunpack.i.h.bf16 %v2812_v0  ;;  %2418 = vmatpush3.bf16.msra.mxu0 %v2417_v27 }
 0x115   :  { %2452 = vmatprep.subr.bf16.mxu1 %v2451_v36  ;;  %1402 = vmatprep.mubr.f32.mxu1 %v2885_v55 }
 0x116   :  { %2420 = vmatprep.subr.bf16.mxu0 %v2419_v24  ;;  %1297 = vmatprep.mubr.f32.mxu0 %v2813_v25  ;;  %v2889_v22 = vpop.trf.xlu1 }
 0x117   :  { %1403 = vmatmul.mubr.f32.gmra.mrb[38].mxu1 %v2888_v13  ;;  %v2817_v11 = vpop.trf.xlu0  ;;  %1298 = vmatmul.mubr.f32.gmra.mrb[38].mxu0 %v2816_v26  ;;  %v2890_v35 = vunpack.i.l.bf16 %v2889_v22  ;;  %v2893_v28 = vunpack.i.h.bf16 %v2889_v22 }
 0x118   :  { %2454 = vmatpush3.bf16.msra.mxu1 %v2453_v37  ;;  %v2818_v34 = vunpack.i.l.bf16 %v2817_v11  ;;  %v2821_v30 = vunpack.i.h.bf16 %v2817_v11  ;;  %2422 = vmatpush3.bf16.msra.mxu0 %v2421_v17 }
 0x119   :  { %2456 = vmatprep.subr.bf16.mxu1 %v2455_v44  ;;  %1407 = vmatprep.mubr.f32.mxu1 %v2890_v35 }
 0x11a   :  { %2424 = vmatprep.subr.bf16.mxu0 %v2423_v43  ;;  %1302 = vmatprep.mubr.f32.mxu0 %v2818_v34  ;;  %v2894_v31 = vpop.trf.xlu1 }
 0x11b   :  { %1408 = vmatmul.mubr.f32.gmra.mrb[40].mxu1 %v2893_v28  ;;  %v2822_v54 = vpop.trf.xlu0  ;;  %1303 = vmatmul.mubr.f32.gmra.mrb[40].mxu0 %v2821_v30  ;;  %v2895_v42 = vunpack.i.l.bf16 %v2894_v31  ;;  %v2898_v50 = vunpack.i.h.bf16 %v2894_v31 }
 0x11c   :  { %2458 = vmatpush3.bf16.msra.mxu1 %v2457_v33  ;;  %v2823_v20 = vunpack.i.l.bf16 %v2822_v54  ;;  %v2826_v1 = vunpack.i.h.bf16 %v2822_v54  ;;  %2426 = vmatpush3.bf16.msra.mxu0 %v2425_v6 }
 0x11d   :  { %2460 = vmatprep.subr.bf16.mxu1 %v2459_v10  ;;  %1412 = vmatprep.mubr.f32.mxu1 %v2895_v42 }
 0x11e   :  { %2428 = vmatprep.subr.bf16.mxu0 %v2427_v7  ;;  %1307 = vmatprep.mubr.f32.mxu0 %v2823_v20  ;;  %v2899_v56 = vpop.trf.xlu1 }
 0x11f   :  { %1413 = vmatmul.mubr.f32.gmra.mrb[42].mxu1 %v2898_v50  ;;  %v2827_v49 = vpop.trf.xlu0  ;;  %1308 = vmatmul.mubr.f32.gmra.mrb[42].mxu0 %v2826_v1  ;;  %v2900_v23 = vunpack.i.l.bf16 %v2899_v56  ;;  %v2903_v3 = vunpack.i.h.bf16 %v2899_v56 }
 0x120   :  { %2462 = vmatpush3.bf16.msra.mxu1 %v2461_v52  ;;  %v2828_v19 = vunpack.i.l.bf16 %v2827_v49  ;;  %v2831_v2 = vunpack.i.h.bf16 %v2827_v49  ;;  %2430 = vmatpush3.bf16.msra.mxu0 %v2429_v4 }
 0x121   :  { %2464 = vmatprep.subr.bf16.mxu1 %v2463_v15  ;;  %1417 = vmatprep.mubr.f32.mxu1 %v2900_v23 }
 0x122   :  { %2432 = vmatprep.subr.bf16.mxu0 %v2431_v46  ;;  %1312 = vmatprep.mubr.f32.mxu0 %v2828_v19  ;;  %v2904_v5 = vpop.trf.xlu1 }
 0x123   :  { %1418 = vmatmul.mubr.f32.gmra.mrb[44].mxu1 %v2903_v3  ;;  %v2832_v59 = vpop.trf.xlu0  ;;  %1313 = vmatmul.mubr.f32.gmra.mrb[44].mxu0 %v2831_v2  ;;  %v2905_v9 = vunpack.i.l.bf16 %v2904_v5  ;;  %v2908_v61 = vunpack.i.h.bf16 %v2904_v5 }
 0x124   :  { %2466 = vmatpush3.bf16.msra.mxu1 %v2465_v39  ;;  %v2833_v53 = vunpack.i.l.bf16 %v2832_v59  ;;  %v2836_v58 = vunpack.i.h.bf16 %v2832_v59  ;;  %2434 = vmatpush3.bf16.msra.mxu0 %v2433_v29 }
 0x125   :  { %2468 = vmatprep.subr.bf16.mxu1 %v2467_v14  ;;  %1422 = vmatprep.mubr.f32.mxu1 %v2905_v9 }
 0x126   :  { %2436 = vmatprep.subr.bf16.mxu0 %v2435_v48  ;;  %1317 = vmatprep.mubr.f32.mxu0 %v2833_v53 }
 0x127   :  { %1423 = vmatmul.mubr.f32.gmra.mrb[46].mxu1 %v2908_v61  ;;  %1318 = vmatmul.mubr.f32.gmra.mrb[46].mxu0 %v2836_v58 }
 0x128   :  { %2470 = vmatpush3.bf16.msra.mxu1 %v2469_v40  ;;  %2438 = vmatpush3.bf16.msra.mxu0 %v2437_v12 }
 0x147   :  { %v3013_v60 = vpop.trf.xlu1 }
 0x148   :  { %v3017_v27 = vunpack.i.h.bf16 %v3013_v60  ;;  %v2941_v18 = vpop.trf.xlu0  ;;  %v3014_v36 = vunpack.i.l.bf16 %v3013_v60 }
 0x149   :  { %v2945_v21 = vunpack.i.h.bf16 %v2941_v18  ;;  %v2942_v62 = vunpack.i.l.bf16 %v2941_v18 }
 0x14a   :  { %1597 = vmatprep.mubr.f32.mxu1 %v3014_v36 }
 0x14b   :  { %1492 = vmatprep.mubr.f32.mxu0 %v2942_v62  ;;  %v3018_v47 = vpop.trf.xlu1  ;;  %1598 = vmatmul.mubr.f32.vlgmr.msra.gmra.mrb[48].mxu1 %v3017_v27 }
 0x14c   :  { %v2946_v57 = vpop.trf.xlu0  ;;  %1493 = vmatmul.mubr.f32.vlgmr.msra.gmra.mrb[48].mxu0 %v2945_v21  ;;  %v3019_v45 = vunpack.i.l.bf16 %v3018_v47  ;;  %v3022_v24 = vunpack.i.h.bf16 %v3018_v47 }
 0x14d   :  { %v2947_v37 = vunpack.i.l.bf16 %v2946_v57  ;;  %v2950_v17 = vunpack.i.h.bf16 %v2946_v57 }
 0x14e   :  { %1602 = vmatprep.mubr.f32.mxu1 %v3019_v45 }
 0x14f   :  { %1497 = vmatprep.mubr.f32.mxu0 %v2947_v37  ;;  %v3023_v63 = vpop.trf.xlu1  ;;  %1603 = vmatmul.mubr.f32.gmra.mrb[50].mxu1 %v3022_v24 }
 0x150   :  { %v2951_v44 = vpop.trf.xlu0  ;;  %1498 = vmatmul.mubr.f32.gmra.mrb[50].mxu0 %v2950_v17  ;;  %v3024_v0 = vunpack.i.l.bf16 %v3023_v63  ;;  %v3027_v55 = vunpack.i.h.bf16 %v3023_v63 }
 0x151   :  { %v2952_v13 = vunpack.i.l.bf16 %v2951_v44  ;;  %v2955_v25 = vunpack.i.h.bf16 %v2951_v44 }
 0x152   :  { %1607 = vmatprep.mubr.f32.mxu1 %v3024_v0 }
 0x153   :  { %1502 = vmatprep.mubr.f32.mxu0 %v2952_v13  ;;  %v3028_v26 = vpop.trf.xlu1  ;;  %1608 = vmatmul.mubr.f32.gmra.mrb[52].mxu1 %v3027_v55 }
 0x154   :  { %v2956_v43 = vpop.trf.xlu0  ;;  %1503 = vmatmul.mubr.f32.gmra.mrb[52].mxu0 %v2955_v25  ;;  %v3029_v33 = vunpack.i.l.bf16 %v3028_v26  ;;  %v3032_v6 = vunpack.i.h.bf16 %v3028_v26 }
 0x155   :  { %v2957_v22 = vunpack.i.l.bf16 %v2956_v43  ;;  %v2960_v10 = vunpack.i.h.bf16 %v2956_v43 }
 0x156   :  { %1612 = vmatprep.mubr.f32.mxu1 %v3029_v33 }
 0x157   :  { %1507 = vmatprep.mubr.f32.mxu0 %v2957_v22  ;;  %v3033_v11 = vpop.trf.xlu1  ;;  %1613 = vmatmul.mubr.f32.gmra.mrb[54].mxu1 %v3032_v6 }
 0x158   :  { %v2961_v35 = vpop.trf.xlu0  ;;  %1508 = vmatmul.mubr.f32.gmra.mrb[54].mxu0 %v2960_v10  ;;  %v3034_v28 = vunpack.i.l.bf16 %v3033_v11  ;;  %v3037_v34 = vunpack.i.h.bf16 %v3033_v11 }
 0x159   :  { %v2962_v30 = vunpack.i.l.bf16 %v2961_v35  ;;  %v2965_v7 = vunpack.i.h.bf16 %v2961_v35 }
 0x15a   :  { %1617 = vmatprep.mubr.f32.mxu1 %v3034_v28 }
 0x15b   :  { %1512 = vmatprep.mubr.f32.mxu0 %v2962_v30  ;;  %v3038_v52 = vpop.trf.xlu1  ;;  %1618 = vmatmul.mubr.f32.gmra.mrb[56].mxu1 %v3037_v34 }
 0x15c   :  { %v2966_v4 = vpop.trf.xlu0  ;;  %1513 = vmatmul.mubr.f32.gmra.mrb[56].mxu0 %v2965_v7  ;;  %v3039_v31 = vunpack.i.l.bf16 %v3038_v52  ;;  %v3042_v15 = vunpack.i.h.bf16 %v3038_v52  ;;  %v1855_v49 = vpop.f32.mrb[0].mxu1 }
 0x15d   :  { %v2967_v54 = vunpack.i.l.bf16 %v2966_v4  ;;  %v2970_v42 = vunpack.i.h.bf16 %v2966_v4  ;;  %v1856_v3 = vpop.f32.mrb[1].mxu1 }
 0x15e   :  { %1622 = vmatprep.mubr.f32.mxu1 %v3039_v31  ;;  %v1799_v20 = vpop.f32.mrb[0].mxu0  ;;  %v1857_v38 = vadd.f32 %v1856_v3, %v1855_v49 }
 0x15f   :  { %1517 = vmatprep.mubr.f32.mxu0 %v2967_v54  ;;  %v3043_v50 = vpop.trf.xlu1  ;;  %1623 = vmatmul.mubr.f32.gmra.mrb[58].mxu1 %v3042_v15  ;;  %v1800_v29 = vpop.f32.mrb[1].mxu0 }
 0x160   :  { %v2971_v1 = vpop.trf.xlu0  ;;  %1518 = vmatmul.mubr.f32.gmra.mrb[58].mxu0 %v2970_v42  ;;  %v3044_v46 = vunpack.i.l.bf16 %v3043_v50  ;;  %v3047_v39 = vunpack.i.h.bf16 %v3043_v50  ;;  %v1801_v23 = vadd.f32 %v1800_v29, %v1799_v20  ;;  %v3065_v29 = vmov 0.0  }
 0x161   :  { %v2972_v56 = vunpack.i.l.bf16 %v2971_v1  ;;  %v2975_v14 = vunpack.i.h.bf16 %v2971_v1  ;;  %14 = vst.msk [vmem:[#allocation2] sm:$0xff] %vm13_vm0, %v3065_v29  ;;  %15 = vst.msk [vmem:[#allocation2 + $0x8] sm:$0xff] %vm13_vm0, %v3065_v29 }
 0x162   :  { %1627 = vmatprep.mubr.f32.mxu1 %v3044_v46  ;;  %v1802_v2 = vpop.f32.mrb[2].mxu0  ;;  %v4881_v5 = vadd.f32 %v1857_v38, %v1801_v23  ;;  %16 = vst.msk [vmem:[#allocation2 + $0x10] sm:$0xff] %vm13_vm0, %v3065_v29  ;;  %17 = vst.msk [vmem:[#allocation2 + $0x18] sm:$0xff] %vm13_vm0, %v3065_v29 }
 0x163   :  { %1522 = vmatprep.mubr.f32.mxu0 %v2972_v56  ;;  %v3048_v19 = vpop.trf.xlu1  ;;  %1628 = vmatmul.mubr.f32.gmra.mrb[60].mxu1 %v3047_v39  ;;  %v1803_v41 = vpop.f32.mrb[3].mxu0  ;;  %18 = vst.msk [vmem:[#allocation2 + $0x20] sm:$0xff] %vm13_vm0, %v3065_v29  ;;  %19 = vst.msk [vmem:[#allocation2 + $0x28] sm:$0xff] %vm13_vm0, %v3065_v29 }
 0x164   :  { %v2976_v51 = vpop.trf.xlu0  ;;  %1523 = vmatmul.mubr.f32.gmra.mrb[60].mxu0 %v2975_v14  ;;  %v3049_v48 = vunpack.i.l.bf16 %v3048_v19  ;;  %v3052_v32 = vunpack.i.h.bf16 %v3048_v19  ;;  %v1858_v16 = vpop.f32.mrb[2].mxu1  ;;  %v1804_v12 = vadd.f32 %v1803_v41, %v1802_v2  ;;  %20 = vst.msk [vmem:[#allocation2 + $0x30] sm:$0xff] %vm13_vm0, %v3065_v29  ;;  %21 = vst.msk [vmem:[#allocation2 + $0x38] sm:$0xff] %vm13_vm0, %v3065_v29 }
 0x165   :  { %v2977_v40 = vunpack.i.l.bf16 %v2976_v51  ;;  %v2980_v8 = vunpack.i.h.bf16 %v2976_v51  ;;  %v1859_v59 = vpop.f32.mrb[3].mxu1 }
 0x166   :  { %1632 = vmatprep.mubr.f32.mxu1 %v3049_v48  ;;  %v1860_v9 = vadd.f32 %v1859_v59, %v1858_v16 }
 0x167   :  { %1527 = vmatprep.mubr.f32.mxu0 %v2977_v40  ;;  %1633 = vmatmul.mubr.f32.gmra.mrb[62].mxu1 %v3052_v32  ;;  %v1805_v61 = vpop.f32.mrb[4].mxu0 }
 0x168   :  { %1528 = vmatmul.mubr.f32.gmra.mrb[62].mxu0 %v2980_v8  ;;  %v1806_v53 = vpop.f32.mrb[5].mxu0  ;;  %v4883_v58 = vadd.f32 %v1860_v9, %v1804_v12  ;;  %v1861_v27 = vpop.f32.mrb[4].mxu1 }
 0x169   :  { %v1807_v60 = vadd.f32 %v1806_v53, %v1805_v61  ;;  %v1862_v18 = vpop.f32.mrb[5].mxu1 }
 0x16a   :  { %v1863_v36 = vadd.f32 %v1862_v18, %v1861_v27 }
 0x16b   :  { %v1808_v21 = vpop.f32.mrb[6].mxu0 }
 0x16c   :  { %v1809_v62 = vpop.f32.mrb[7].mxu0  ;;  %v4885_v47 = vadd.f32 %v1863_v36, %v1807_v60 }
 0x16d   :  { %v1810_v57 = vadd.f32 %v1809_v62, %v1808_v21 }
 0x16e   :  { %v1864_v45 = vpop.f32.mrb[6].mxu1 }
 0x16f   :  { %v1865_v24 = vpop.f32.mrb[7].mxu1 }
 0x170   :  { %v1811_v37 = vpop.f32.mrb[8].mxu0  ;;  %v1866_v17 = vadd.f32 %v1865_v24, %v1864_v45 }
 0x171   :  { %v1812_v63 = vpop.f32.mrb[9].mxu0 }
 0x172   :  { %v1813_v44 = vadd.f32 %v1812_v63, %v1811_v37  ;;  %v4887_v0 = vadd.f32 %v1866_v17, %v1810_v57 }
 0x173   :  { %v1867_v55 = vpop.f32.mrb[8].mxu1 }
 0x174   :  { %v1868_v13 = vpop.f32.mrb[9].mxu1 }
 0x175   :  { %v1869_v25 = vadd.f32 %v1868_v13, %v1867_v55 }
 0x176   :  { %v1814_v26 = vpop.f32.mrb[10].mxu0 }
 0x177   :  { %v1815_v43 = vpop.f32.mrb[11].mxu0  ;;  %v4889_v33 = vadd.f32 %v1869_v25, %v1813_v44 }
 0x178   :  { %v1816_v6 = vadd.f32 %v1815_v43, %v1814_v26  ;;  %v1870_v22 = vpop.f32.mrb[10].mxu1 }
 0x179   :  { %v1871_v10 = vpop.f32.mrb[11].mxu1 }
 0x17a   :  { %v1872_v11 = vadd.f32 %v1871_v10, %v1870_v22 }
 0x17b   :  { %v1817_v35 = vpop.f32.mrb[12].mxu0 }
 0x17c   :  { %v1818_v28 = vpop.f32.mrb[13].mxu0  ;;  %v4891_v34 = vadd.f32 %v1872_v11, %v1816_v6 }
 0x17d   :  { %v1819_v30 = vadd.f32 %v1818_v28, %v1817_v35 }
 0x17e   :  { %v1873_v7 = vpop.f32.mrb[12].mxu1 }
 0x17f   :  { %v1874_v52 = vpop.f32.mrb[13].mxu1 }
 0x180   :  { %v1820_v4 = vpop.f32.mrb[14].mxu0  ;;  %v1875_v31 = vadd.f32 %v1874_v52, %v1873_v7 }
 0x181   :  { %v1821_v15 = vpop.f32.mrb[15].mxu0 }
 0x182   :  { %v1822_v54 = vadd.f32 %v1821_v15, %v1820_v4  ;;  %v4893_v42 = vadd.f32 %v1875_v31, %v1819_v30 }
 0x183   :  { %v1876_v50 = vpop.f32.mrb[14].mxu1 }
 0x184   :  { %v1877_v20 = vpop.f32.mrb[15].mxu1 }
 0x185   :  { %v1878_v1 = vadd.f32 %v1877_v20, %v1876_v50 }
 0x187   :  { %v4895_v46 = vadd.f32 %v1878_v1, %v1822_v54 }
 0x19c   :  { %v1967_v14 = vpop.f32.mrb[16].mxu1 }
 0x19d   :  { %v1968_v23 = vpop.f32.mrb[17].mxu1 }
 0x19e   :  { %v1911_v39 = vpop.f32.mrb[16].mxu0  ;;  %v1969_v3 = vadd.f32 %v1968_v23, %v1967_v14 }
 0x19f   :  { %v1912_v56 = vpop.f32.mrb[17].mxu0 }
 0x1a0   :  { %v1913_v49 = vadd.f32 %v1912_v56, %v1911_v39  ;;  %v1970_v32 = vpop.f32.mrb[18].mxu1 }
 0x1a1   :  { %v1971_v41 = vpop.f32.mrb[19].mxu1 }
 0x1a2   :  { %v1075_v19 = vadd.f32 %v1913_v49, %v4881_v5  ;;  %v1972_v8 = vadd.f32 %v1971_v41, %v1970_v32 }
 0x1a3   :  { %v1914_v2 = vpop.f32.mrb[18].mxu0 }
 0x1a4   :  { %v1915_v38 = vpop.f32.mrb[19].mxu0  ;;  %v1180_v51 = vadd.f32 %v1969_v3, %v1075_v19 }
 0x1a5   :  { %v1916_v48 = vadd.f32 %v1915_v38, %v1914_v2 }
 0x1a7   :  { %v1080_v40 = vadd.f32 %v1916_v48, %v4883_v58  ;;  %v1917_v16 = vpop.f32.mrb[20].mxu0 }
 0x1a8   :  { %v1918_v59 = vpop.f32.mrb[21].mxu0 }
 0x1a9   :  { %v4907_v12 = vadd.f32 %v1972_v8, %v1080_v40  ;;  %v1919_v9 = vadd.f32 %v1918_v59, %v1917_v16  ;;  %v1973_v61 = vpop.f32.mrb[20].mxu1 }
 0x1aa   :  { %v1974_v53 = vpop.f32.mrb[21].mxu1 }
 0x1ab   :  { %v1085_v60 = vadd.f32 %v1919_v9, %v4885_v47  ;;  %v1975_v27 = vadd.f32 %v1974_v53, %v1973_v61  ;;  %v1920_v5 = vpop.f32.mrb[22].mxu0 }
 0x1ac   :  { %v1921_v36 = vpop.f32.mrb[23].mxu0 }
 0x1ad   :  { %v4910_v18 = vadd.f32 %v1975_v27, %v1085_v60  ;;  %v1922_v21 = vadd.f32 %v1921_v36, %v1920_v5 }
 0x1ae   :  { %v1976_v62 = vpop.f32.mrb[22].mxu1 }
 0x1af   :  { %v1090_v57 = vadd.f32 %v1922_v21, %v4887_v0  ;;  %v1977_v58 = vpop.f32.mrb[23].mxu1 }
 0x1b0   :  { %v1978_v45 = vadd.f32 %v1977_v58, %v1976_v62 }
 0x1b1   :  { %v1923_v24 = vpop.f32.mrb[24].mxu0 }
 0x1b2   :  { %v1924_v37 = vpop.f32.mrb[25].mxu0  ;;  %v1195_v17 = vadd.f32 %v1978_v45, %v1090_v57 }
 0x1b3   :  { %v1925_v63 = vadd.f32 %v1924_v37, %v1923_v24 }
 0x1b4   :  { %v1979_v44 = vpop.f32.mrb[24].mxu1 }
 0x1b5   :  { %v1095_v55 = vadd.f32 %v1925_v63, %v4889_v33  ;;  %v1980_v13 = vpop.f32.mrb[25].mxu1 }
 0x1b6   :  { %v1981_v47 = vadd.f32 %v1980_v13, %v1979_v44  ;;  %v1926_v25 = vpop.f32.mrb[26].mxu0 }
 0x1b7   :  { %v1927_v43 = vpop.f32.mrb[27].mxu0 }
 0x1b8   :  { %v4914_v26 = vadd.f32 %v1981_v47, %v1095_v55  ;;  %v1928_v6 = vadd.f32 %v1927_v43, %v1926_v25 }
 0x1b9   :  { %v1982_v22 = vpop.f32.mrb[26].mxu1 }
 0x1ba   :  { %v1983_v10 = vpop.f32.mrb[27].mxu1  ;;  %v1100_v0 = vadd.f32 %v1928_v6, %v4891_v34 }
 0x1bb   :  { %v1984_v11 = vadd.f32 %v1983_v10, %v1982_v22 }
 0x1bc   :  { %v1929_v35 = vpop.f32.mrb[28].mxu0 }
 0x1bd   :  { %v4917_v28 = vadd.f32 %v1984_v11, %v1100_v0  ;;  %v1930_v30 = vpop.f32.mrb[29].mxu0 }
 0x1be   :  { %v1931_v7 = vadd.f32 %v1930_v30, %v1929_v35  ;;  %v1985_v52 = vpop.f32.mrb[28].mxu1 }
 0x1bf   :  { %v1986_v4 = vpop.f32.mrb[29].mxu1 }
 0x1c0   :  { %v1105_v33 = vadd.f32 %v1931_v7, %v4893_v42  ;;  %v1987_v31 = vadd.f32 %v1986_v4, %v1985_v52 }
 0x1c1   :  { %v1932_v15 = vpop.f32.mrb[30].mxu0 }
 0x1c2   :  { %v1933_v54 = vpop.f32.mrb[31].mxu0  ;;  %v1210_v50 = vadd.f32 %v1987_v31, %v1105_v33 }
 0x1c3   :  { %v1934_v20 = vadd.f32 %v1933_v54, %v1932_v15 }
 0x1c4   :  { %v1988_v1 = vpop.f32.mrb[30].mxu1 }
 0x1c5   :  { %v1110_v39 = vadd.f32 %v1934_v20, %v4895_v46  ;;  %v1989_v29 = vpop.f32.mrb[31].mxu1 }
 0x1c6   :  { %v1990_v34 = vadd.f32 %v1989_v29, %v1988_v1 }
 0x1c8   :  { %v4921_v56 = vadd.f32 %v1990_v34, %v1110_v39 }
 0x1dd   :  { %v2079_v14 = vpop.f32.mrb[32].mxu1 }
 0x1de   :  { %v2023_v49 = vpop.f32.mrb[32].mxu0  ;;  %v2080_v23 = vpop.f32.mrb[33].mxu1 }
 0x1df   :  { %v2024_v3 = vpop.f32.mrb[33].mxu0  ;;  %v2081_v19 = vadd.f32 %v2080_v23, %v2079_v14 }
 0x1e0   :  { %v2025_v2 = vadd.f32 %v2024_v3, %v2023_v49 }
 0x1e2   :  { %v2082_v42 = vpop.f32.mrb[34].mxu1  ;;  %v1285_v38 = vadd.f32 %v2025_v2, %v1180_v51  ;;  %v2026_v48 = vpop.f32.mrb[34].mxu0 }
 0x1e3   :  { %v2083_v32 = vpop.f32.mrb[35].mxu1  ;;  %v2027_v41 = vpop.f32.mrb[35].mxu0 }
 0x1e4   :  { %v2084_v40 = vadd.f32 %v2083_v32, %v2082_v42  ;;  %v1390_v8 = vadd.f32 %v2081_v19, %v1285_v38  ;;  %v2028_v16 = vadd.f32 %v2027_v41, %v2026_v48 }
 0x1e6   :  { %v2085_v59 = vpop.f32.mrb[36].mxu1  ;;  %v1290_v46 = vadd.f32 %v2028_v16, %v4907_v12  ;;  %v2029_v9 = vpop.f32.mrb[36].mxu0 }
 0x1e7   :  { %v2086_v61 = vpop.f32.mrb[37].mxu1  ;;  %v2030_v53 = vpop.f32.mrb[37].mxu0 }
 0x1e8   :  { %v2087_v60 = vadd.f32 %v2086_v61, %v2085_v59  ;;  %v1395_v27 = vadd.f32 %v2084_v40, %v1290_v46  ;;  %v2031_v5 = vadd.f32 %v2030_v53, %v2029_v9  ;;  %v278_v40 = vld [vmem:[#allocation2] sm:$0xff] }
 0x1ea   :  { %v2088_v36 = vpop.f32.mrb[38].mxu1  ;;  %v1295_v21 = vadd.f32 %v2031_v5, %v4910_v18  ;;  %v2032_v62 = vpop.f32.mrb[38].mxu0 }
 0x1eb   :  { %v2089_v51 = vpop.f32.mrb[39].mxu1  ;;  %v2033_v57 = vpop.f32.mrb[39].mxu0 }
 0x1ec   :  { %v2090_v58 = vadd.f32 %v2089_v51, %v2088_v36  ;;  %v4925_v45 = vadd.f32 %v2087_v60, %v1295_v21  ;;  %v2034_v24 = vadd.f32 %v2033_v57, %v2032_v62  ;;  %v279_v36 = vld [vmem:[#allocation2 + $0x8] sm:$0xff] }
 0x1ee   :  { %v2091_v37 = vpop.f32.mrb[40].mxu1  ;;  %v1300_v63 = vadd.f32 %v2034_v24, %v1195_v17  ;;  %v2035_v44 = vpop.f32.mrb[40].mxu0 }
 0x1ef   :  { %v2092_v12 = vpop.f32.mrb[41].mxu1  ;;  %v2036_v55 = vpop.f32.mrb[41].mxu0 }
 0x1f0   :  { %v2093_v13 = vadd.f32 %v2092_v12, %v2091_v37  ;;  %v4927_v47 = vadd.f32 %v2090_v58, %v1300_v63  ;;  %v2037_v25 = vadd.f32 %v2036_v55, %v2035_v44  ;;  %v280_v44 = vld [vmem:[#allocation2 + $0x10] sm:$0xff] }
 0x1f2   :  { %v2094_v43 = vpop.f32.mrb[42].mxu1  ;;  %v1305_v6 = vadd.f32 %v2037_v25, %v4914_v26  ;;  %v2038_v18 = vpop.f32.mrb[42].mxu0 }
 0x1f3   :  { %v2095_v22 = vpop.f32.mrb[43].mxu1  ;;  %v2039_v10 = vpop.f32.mrb[43].mxu0 }
 0x1f4   :  { %v2096_v0 = vadd.f32 %v2095_v22, %v2094_v43  ;;  %v4930_v11 = vadd.f32 %v2093_v13, %v1305_v6  ;;  %v2040_v35 = vadd.f32 %v2039_v10, %v2038_v18  ;;  %v1666_v43 = vlaneseq }
 0x1f6   :  { %v2097_v30 = vpop.f32.mrb[44].mxu1  ;;  %v1310_v17 = vadd.f32 %v2040_v35, %v4917_v28  ;;  %v2041_v7 = vpop.f32.mrb[44].mxu0 }
 0x1f7   :  { %v2098_v52 = vpop.f32.mrb[45].mxu1  ;;  %v2042_v33 = vpop.f32.mrb[45].mxu0 }
 0x1f8   :  { %v2099_v4 = vadd.f32 %v2098_v52, %v2097_v30  ;;  %v4933_v31 = vadd.f32 %v2096_v0, %v1310_v17  ;;  %v2043_v15 = vadd.f32 %v2042_v33, %v2041_v7  ;;  %v281_v0 = vld [vmem:[#allocation2 + $0x18] sm:$0xff]  ;;  %v4945_v52 = vshrl.u32 %v1666_v43, 7 }
 0x1fa   :  { %v2100_v54 = vpop.f32.mrb[46].mxu1  ;;  %v1315_v20 = vadd.f32 %v2043_v15, %v1210_v50  ;;  %v2044_v26 = vpop.f32.mrb[46].mxu0 }
 0x1fb   :  { %v2101_v1 = vpop.f32.mrb[47].mxu1  ;;  %v2045_v39 = vpop.f32.mrb[47].mxu0 }
 0x1fc   :  { %v2102_v29 = vadd.f32 %v2101_v1, %v2100_v54  ;;  %v4935_v34 = vadd.f32 %v2099_v4, %v1315_v20  ;;  %v2046_v14 = vadd.f32 %v2045_v39, %v2044_v26  ;;  %v282_v20 = vld [vmem:[#allocation2 + $0x20] sm:$0xff]  ;;  %v1668_v1 = vadd.s32 8, %v4945_v52 }
 0x1fe   :  { %v1320_v49 = vadd.f32 %v2046_v14, %v4921_v56 }
 0x200   :  { %v4938_v23 = vadd.f32 %v2102_v29, %v1320_v49  ;;  %v4950_v49 = vand.u32 127, %v1666_v43 }
 0x202   :  { %vm1678_vm1 = vcmp.eq.s32.totalorder %v1668_v1, %v4950_v49  ;;  %vm1677_vm2 = vcmp.eq.s32.totalorder %v4945_v52, %v4950_v49  ;;  %v1674_v1 = vadd.s32 56, %v4945_v52 }
 0x204   :  { %vm1684_vm8 = vcmp.eq.s32.totalorder %v1674_v1, %v4950_v49 }
 0x21e   :  { %v2191_v28 = vpop.f32.mrb[48].mxu1 }
 0x21f   :  { %v2135_v3 = vpop.f32.mrb[48].mxu0  ;;  %v2192_v19 = vpop.f32.mrb[49].mxu1 }
 0x220   :  { %v2136_v2 = vpop.f32.mrb[49].mxu0  ;;  %v2193_v42 = vadd.f32 %v2192_v19, %v2191_v28 }
 0x221   :  { %v2137_v38 = vadd.f32 %v2136_v2, %v2135_v3 }
 0x222   :  { %v2194_v48 = vpop.f32.mrb[50].mxu1 }
 0x223   :  { %v1495_v32 = vadd.f32 %v2137_v38, %v1390_v8  ;;  %v2138_v50 = vpop.f32.mrb[50].mxu0  ;;  %v2195_v41 = vpop.f32.mrb[51].mxu1 }
 0x224   :  { %v2139_v16 = vpop.f32.mrb[51].mxu0  ;;  %v2196_v59 = vadd.f32 %v2195_v41, %v2194_v48 }
 0x225   :  { %v1600_v46 = vadd.f32 %v2193_v42, %v1495_v32  ;;  %v2140_v9 = vadd.f32 %v2139_v16, %v2138_v50  ;;  %v1669_v32 = vadd.s32 16, %v4945_v52 }
 0x226   :  { %v2197_v61 = vpop.f32.mrb[52].mxu1 }
 0x227   :  { %v1638_v53 = vadd.f32 %v1600_v46, %v278_v40  ;;  %v1500_v56 = vadd.f32 %v2140_v9, %v1395_v27  ;;  %v2141_v60 = vpop.f32.mrb[52].mxu0  ;;  %v2198_v5 = vpop.f32.mrb[53].mxu1  ;;  %vm1679_vm3 = vcmp.eq.s32.totalorder %v1669_v32, %v4950_v49 }
 0x228   :  { %v2142_v21 = vpop.f32.mrb[53].mxu0  ;;  %v2199_v62 = vadd.f32 %v2198_v5, %v2197_v61 }
 0x229   :  { %1647 = vst.msk [vmem:[#allocation2] sm:$0xff] %vm13_vm0, %v1638_v53  ;;  %v1605_v51 = vadd.f32 %v2196_v59, %v1500_v56  ;;  %v2143_v57 = vadd.f32 %v2142_v21, %v2141_v60  ;;  %v1670_v59 = vadd.s32 24, %v4945_v52  ;;  %v284_v56 = vld [vmem:[#allocation2 + $0x30] sm:$0xff]  ;;  %v1671_v21 = vadd.s32 32, %v4945_v52 }
 0x22a   :  { %v2200_v8 = vpop.f32.mrb[54].mxu1 }
 0x22b   :  { %v1639_v58 = vadd.f32 %v1605_v51, %v279_v36  ;;  %v1505_v24 = vadd.f32 %v2143_v57, %v4925_v45  ;;  %v2144_v37 = vpop.f32.mrb[54].mxu0  ;;  %v2201_v63 = vpop.f32.mrb[55].mxu1  ;;  %vm1680_vm4 = vcmp.eq.s32.totalorder %v1670_v59, %v4950_v49  ;;  %vm1681_vm5 = vcmp.eq.s32.totalorder %v1671_v21, %v4950_v49 }
 0x22c   :  { %v2145_v12 = vpop.f32.mrb[55].mxu0  ;;  %v2202_v55 = vadd.f32 %v2201_v63, %v2200_v8 }
 0x22d   :  { %1648 = vst.msk [vmem:[#allocation2 + $0x8] sm:$0xff] %vm13_vm0, %v1639_v58  ;;  %v1610_v27 = vadd.f32 %v2199_v62, %v1505_v24  ;;  %v2146_v13 = vadd.f32 %v2145_v12, %v2144_v37  ;;  %v1672_v62 = vadd.s32 40, %v4945_v52 }
 0x22e   :  { %v2203_v25 = vpop.f32.mrb[56].mxu1 }
 0x22f   :  { %v1640_v6 = vadd.f32 %v1610_v27, %v280_v44  ;;  %v1510_v18 = vadd.f32 %v2146_v13, %v4927_v47  ;;  %v2147_v22 = vpop.f32.mrb[56].mxu0  ;;  %v2204_v10 = vpop.f32.mrb[57].mxu1  ;;  %v285_v27 = vld [vmem:[#allocation2 + $0x38] sm:$0xff]  ;;  %vm1682_vm6 = vcmp.eq.s32.totalorder %v1672_v62, %v4950_v49 }
 0x230   :  { %v2148_v35 = vpop.f32.mrb[57].mxu0  ;;  %v2205_v30 = vadd.f32 %v2204_v10, %v2203_v25  ;;  %v1658_v16 = vld [vmem:[#allocation2] sm:$0xff]  ;;  %v1673_v10 = vadd.s32 48, %v4945_v52 }
 0x231   :  { %1649 = vst.msk [vmem:[#allocation2 + $0x10] sm:$0xff] %vm13_vm0, %v1640_v6  ;;  %v1615_v45 = vadd.f32 %v2202_v55, %v1510_v18  ;;  %v2149_v17 = vadd.f32 %v2148_v35, %v2147_v22  ;;  %v1717_v37 = vmul.f32 %v1658_v16, %v1658_v16 }
 0x232   :  { %v2206_v7 = vpop.f32.mrb[58].mxu1  ;;  %vm1683_vm7 = vcmp.eq.s32.totalorder %v1673_v10, %v4950_v49 }
 0x233   :  { %v1641_v33 = vadd.f32 %v1615_v45, %v281_v0  ;;  %v1515_v4 = vadd.f32 %v2149_v17, %v4930_v11  ;;  %v2150_v15 = vpop.f32.mrb[58].mxu0  ;;  %v2207_v54 = vpop.f32.mrb[59].mxu1  ;;  %v283_v11 = vld [vmem:[#allocation2 + $0x28] sm:$0xff]  ;;  %v1725_v35 = vsel %vm13_vm0, %v1717_v37, 0.0 }
 0x234   :  { %v2151_v26 = vpop.f32.mrb[59].mxu0  ;;  %v2208_v47 = vadd.f32 %v2207_v54, %v2206_v7  ;;  %v1659_v48 = vld [vmem:[#allocation2 + $0x8] sm:$0xff] }
 0x235   :  { %1650 = vst.msk [vmem:[#allocation2 + $0x18] sm:$0xff] %vm13_vm0, %v1641_v33  ;;  %v1620_v39 = vadd.f32 %v2205_v30, %v1515_v4  ;;  %v2152_v29 = vadd.f32 %v2151_v26, %v2150_v15  ;;  %v1686_v53 = vsel %vm1678_vm1, %v1659_v48, 0.0  ;;  %v1718_v8 = vmul.f32 %v1659_v48, %v1659_v48 }
 0x236   :  { %v2209_v14 = vpop.f32.mrb[60].mxu1  ;;  %v1694_v24 = vsel %vm13_vm0, %v1686_v53, 0.0 }
 0x237   :  { %v1642_v28 = vadd.f32 %v1620_v39, %v282_v20  ;;  %v1520_v3 = vadd.f32 %v2152_v29, %v4933_v31  ;;  %v2153_v19 = vpop.f32.mrb[60].mxu0  ;;  %v2210_v2 = vpop.f32.mrb[61].mxu1  ;;  %v1726_v22 = vsel %vm13_vm0, %v1718_v8, 0.0 }
 0x238   :  { %v2154_v42 = vpop.f32.mrb[61].mxu0  ;;  %v2211_v38 = vadd.f32 %v2210_v2, %v2209_v14  ;;  %v1660_v36 = vld [vmem:[#allocation2 + $0x10] sm:$0xff]  ;;  %v1727_v15 = vadd.f32 %v1726_v22, %v1725_v35 }
 0x239   :  { %1651 = vst.msk [vmem:[#allocation2 + $0x20] sm:$0xff] %vm13_vm0, %v1642_v28  ;;  %v1625_v50 = vadd.f32 %v2208_v47, %v1520_v3  ;;  %v2155_v41 = vadd.f32 %v2154_v42, %v2153_v19  ;;  %v1687_v12 = vsel %vm1679_vm3, %v1660_v36, 0.0  ;;  %v1719_v55 = vmul.f32 %v1660_v36, %v1660_v36 }
 0x23a   :  { %v2212_v40 = vpop.f32.mrb[62].mxu1  ;;  %v1696_v0 = vsel %vm13_vm0, %v1687_v12, 0.0 }
 0x23b   :  { %v1643_v31 = vadd.f32 %v1625_v50, %v283_v11  ;;  %v1525_v46 = vadd.f32 %v2155_v41, %v4935_v34  ;;  %v2156_v9 = vpop.f32.mrb[62].mxu0  ;;  %v2213_v61 = vpop.f32.mrb[63].mxu1  ;;  %v1685_v34 = vsel %vm1677_vm2, %v1658_v16, 0.0  ;;  %v1728_v7 = vsel %vm13_vm0, %v1719_v55, 0.0 }
 0x23c   :  { %v2157_v60 = vpop.f32.mrb[63].mxu0  ;;  %v2214_v5 = vadd.f32 %v2213_v61, %v2212_v40  ;;  %v1661_v58 = vld [vmem:[#allocation2 + $0x18] sm:$0xff]  ;;  %v1693_v25 = vsel %vm13_vm0, %v1685_v34, 0.0  ;;  %v1729_v29 = vadd.f32 %v1728_v7, %v1727_v15 }
 0x23d   :  { %1652 = vst.msk [vmem:[#allocation2 + $0x28] sm:$0xff] %vm13_vm0, %v1643_v31  ;;  %v1630_v51 = vadd.f32 %v2211_v38, %v1525_v46  ;;  %v2158_v57 = vadd.f32 %v2157_v60, %v2156_v9  ;;  %v1688_v6 = vsel %vm1680_vm4, %v1661_v58, 0.0  ;;  %v1720_v18 = vmul.f32 %v1661_v58, %v1661_v58 }
 0x23e   :  { %v1698_v4 = vsel %vm13_vm0, %v1688_v6, 0.0 }
 0x23f   :  { %v1644_v63 = vadd.f32 %v1630_v51, %v284_v56  ;;  %v1530_v44 = vadd.f32 %v2158_v57, %v4938_v23  ;;  %v1695_v23 = vadd.f32 %v1694_v24, %v1693_v25  ;;  %v1730_v47 = vsel %vm13_vm0, %v1720_v18, 0.0 }
 0x240   :  { %v1662_v13 = vld [vmem:[#allocation2 + $0x20] sm:$0xff]  ;;  %v1731_v2 = vadd.f32 %v1730_v47, %v1729_v29 }
 0x241   :  { %1653 = vst.msk [vmem:[#allocation2 + $0x30] sm:$0xff] %vm13_vm0, %v1644_v63  ;;  %v1635_v43 = vadd.f32 %v2214_v5, %v1530_v44  ;;  %v1689_v45 = vsel %vm1681_vm5, %v1662_v13, 0.0  ;;  %v1721_v17 = vmul.f32 %v1662_v13, %v1662_v13  ;;  %v1697_v20 = vadd.f32 %v1696_v0, %v1695_v23 }
 0x242   :  { %v1700_v39 = vsel %vm13_vm0, %v1689_v45, 0.0 }
 0x243   :  { %v1645_v30 = vadd.f32 %v1635_v43, %v285_v27  ;;  %v1699_v14 = vadd.f32 %v1698_v4, %v1697_v20  ;;  %v1732_v28 = vsel %vm13_vm0, %v1721_v17, 0.0 }
 0x244   :  { %v1663_v33 = vld [vmem:[#allocation2 + $0x28] sm:$0xff]  ;;  %v1733_v32 = vadd.f32 %v1732_v28, %v1731_v2 }
 0x245   :  { %1654 = vst.msk [vmem:[#allocation2 + $0x38] sm:$0xff] %vm13_vm0, %v1645_v30  ;;  %v1690_v54 = vsel %vm1682_vm6, %v1663_v33, 0.0  ;;  %v1722_v26 = vmul.f32 %v1663_v33, %v1663_v33  ;;  %v1701_v42 = vadd.f32 %v1700_v39, %v1699_v14 }
 0x246   :  { %v1702_v19 = vsel %vm13_vm0, %v1690_v54, 0.0 }
 0x247   :  { %v1734_v48 = vsel %vm13_vm0, %v1722_v26, 0.0  ;;  %v1703_v50 = vadd.f32 %v1702_v19, %v1701_v42 }
 0x248   :  { %v1664_v3 = vld [vmem:[#allocation2 + $0x30] sm:$0xff]  ;;  %v1735_v16 = vadd.f32 %v1734_v48, %v1733_v32 }
 0x249   :  { %v1691_v11 = vsel %vm1683_vm7, %v1664_v3, 0.0  ;;  %v1723_v38 = vmul.f32 %v1664_v3, %v1664_v3 }
 0x24a   :  { %v1704_v52 = vsel %vm13_vm0, %v1691_v11, 0.0 }
 0x24b   :  { %v1736_v41 = vsel %vm13_vm0, %v1723_v38, 0.0  ;;  %v1705_v31 = vadd.f32 %v1704_v52, %v1703_v50 }
 0x24c   :  { %v1665_v40 = vld [vmem:[#allocation2 + $0x38] sm:$0xff]  ;;  %v1737_v61 = vadd.f32 %v1736_v41, %v1735_v16 }
 0x24d   :  { %v1692_v59 = vsel %vm1684_vm8, %v1665_v40, 0.0  ;;  %v1724_v46 = vmul.f32 %v1665_v40, %v1665_v40 }
 0x24e   :  { %v1706_v9 = vsel %vm13_vm0, %v1692_v59, 0.0 }
 0x24f   :  { %v1707_v53 = vadd.f32 %v1706_v9, %v1705_v31  ;;  %v1738_v56 = vsel %vm13_vm0, %v1724_v46, 0.0 }
 0x250   :  { %v1739_v60 = vadd.f32 %v1738_v56, %v1737_v61 }
 0x251   :  { %1708 = vadd.xlane.f32.xlu0 %v1707_v53 }
 0x252   :  { %1740 = vadd.xlane.f32.xlu1 %v1739_v60 }
 0x2de   :  { %v1709_v49 = vpop.xlane.xlu0 %1708 }
 0x2df   :  { %v1710_v5 = vrot.slane %v1709_v49, 4  ;;  %v1741_v36 = vpop.xlane.xlu1 %1740 }
 0x2e0   :  { %v1742_v21 = vrot.slane %v1741_v36, 4 }
 0x2e1   :  { %v1711_v62 = vadd.f32 %v1710_v5, %v1709_v49 }
 0x2e2   :  { %v1743_v51 = vadd.f32 %v1742_v21, %v1741_v36 }
 0x2e3   :  { %v1712_v57 = vrot.slane %v1711_v62, 2 }
 0x2e4   :  { %v1744_v34 = vrot.slane %v1743_v51, 2 }
 0x2e5   :  { %v1713_v8 = vadd.f32 %v1712_v57, %v1711_v62 }
 0x2e6   :  { %v1745_v58 = vadd.f32 %v1744_v34, %v1743_v51 }
 0x2e7   :  { %v1714_v24 = vrot.slane %v1713_v8, 1 }
 0x2e8   :  { %v1746_v37 = vrot.slane %v1745_v58, 1 }
 0x2e9   :  { %v1715_v63 = vadd.f32 %v1714_v24, %v1713_v8 }
 0x2ea   :  { %v1747_v44 = vadd.f32 %v1746_v37, %v1745_v58 }
 0x2eb   :  { %2471 = vpush %v1715_v63 }
 0x2ec   :  { %2473 = vpush %v1747_v44 }
 0x31c   :  { %s2472_s0 = spop %2471 }
 0x31d   :  { %s1749_s25 = smul.f32 2.0, %s2472_s0  ;;  %s2474_s26 = spop %2473 }
 0x31f   :  { %s1750_s27 = ssub.f32 %s2474_s26, %s1749_s25 }
 0x321   :  { %s1751_s28 = sadd.f32 64.0, %s1750_s27 }
 0x323   :  { %1753 = sst [smem:[#allocation3]] %s1751_s28 }
 0x324   :  { %3062 = shalt.err (!%p3059_p2)
}
 0x325   :  { %s3066_s7 = smov [#allocation3]  }
 0x326   :  { %1761 = dma.smem_to_hbm %s3066_s7, 16, %s5008_s1, [#allocation4]  }
 0x327   :  { %3063 = dma.done.wait [#allocation4], 16  }
 0x328   :  { %3064 = vsyncadd [#allocation4], 4294967280 }
 0x329   :  { %1765 = sfence }
 0x32a   :  { %1766 = vsyncpa [#allocation4], 1 }

</bundles_post_ra>
